<compile_context>
chip_gen: v6e
topology: v6e:2x2x1
jax: 0.10.0
libtpu: 0.0.40
codegen_flags: <defaults>
</compile_context>

<pallas_src>
import functools

import jax
import jax.numpy as jnp
from jax import lax
from jax.experimental import pallas as pl
from jax.experimental.pallas import tpu as pltpu

THRESH = 0.5   # global `thresh` used by ActFun
DECAY = 0.25   # LIFNode init_decay
BN_EPS = 1e-5


# ----------------------------------------------------------------------------
# Pallas kernel
# ----------------------------------------------------------------------------
def _attn_kernel(x_ref, wqkv_ref, bqkv_ref, wl_ref, bl_ref, o_ref, *, heads):
    Bc, T, L, D = x_ref.shape          # Bc batches handled by this grid block
    dh = D // heads
    M = Bc * L                         # batch folded into matmul rows
    G = heads * Bc                     # (head, batch)-batched attention dim

    # ---- hoisted invariants (outside the unrolled T loop) -------------------
    w_qkv = wqkv_ref[...]                                        # [D, 3D]
    w_l = wl_ref[...]                                            # [D, D]
    # view w_l as [H, dh, D]: head merge folded into the final linear
    wl_h = [w_l[h * dh:(h + 1) * dh, :] for h in range(heads)]
    b_qkv = jnp.broadcast_to(bqkv_ref[...], (M, 3 * D))          # hoisted broadcast
    b_l = jnp.broadcast_to(bl_ref[...], (M, D))

    # causal mask (torch.tril of ones, masked_fill with 0) -- built once
    row = lax.broadcasted_iota(jnp.int32, (L, L), 0)
    col = lax.broadcasted_iota(jnp.int32, (L, L), 1)
    causal = (row >= col)[None, :, :]                            # [1, L, L]

    # membrane potentials / spikes carried as values across the unrolled T loop
    mem_first = spk_first = None
    mem_qkv = spk_qkv = None           # q|k|v LIFs fused (same decay/threshold)
    mem_attn = spk_attn = None

    for t in range(T):
        x_t = x_ref[:, t].reshape(M, D)                          # [M, D]

        # first_lif (heaviside at THRESH; branchless)
        if t == 0:
            mem_first = x_t
        else:
            mem_first = mem_first * (DECAY * (1.0 - spk_first)) + x_t
        spk_first = (mem_first > THRESH).astype(jnp.float32)

        # fused q|k|v Linear + folded eval-BN: one [M, D] @ [D, 3D] matmul
        qkv = jnp.dot(spk_first, w_qkv, preferred_element_type=jnp.float32) + b_qkv

        # q_lif / k_lif / v_lif fused into one elementwise LIF over [M, 3D]
        if t == 0:
            mem_qkv = qkv
        else:
            mem_qkv = mem_qkv * (DECAY * (1.0 - spk_qkv)) + qkv
        spk_qkv = (mem_qkv > THRESH).astype(jnp.float32)

        # (head, batch)-batched attention: two batched dot_generals,
        # no per-head matmul loop and no lane-interleave concat.
        s3 = spk_qkv.reshape(Bc, L, 3 * D)
        qg = jnp.concatenate(
            [s3[:, :, h * dh:(h + 1) * dh] for h in range(heads)], axis=0)
        kg = jnp.concatenate(
            [s3[:, :, D + h * dh:D + (h + 1) * dh] for h in range(heads)], axis=0)
        vg = jnp.concatenate(
            [s3[:, :, 2 * D + h * dh:2 * D + (h + 1) * dh] for h in range(heads)],
            axis=0)                                              # each [G, L, dh]

        scores = jnp.einsum('gld,gmd->glm', qg, kg,
                            preferred_element_type=jnp.float32)  # [G, L, L]
        scores = jnp.where(causal, scores, 0.0)                  # tril, no softmax
        attn_g = jnp.einsum('glm,gmd->gld', scores, vg,
                            preferred_element_type=jnp.float32)  # [G, L, dh]
        # TODO(synk): for production L >> dh this is exactly causal linear
        # attention; switch to a running [dh, dh] state per head.

        # attn_lif (elementwise; stays in head-batched layout, no un-transpose)
        if t == 0:
            mem_attn = attn_g
        else:
            mem_attn = mem_attn * (DECAY * (1.0 - spk_attn)) + attn_g
        spk_attn = (mem_attn > THRESH).astype(jnp.float32)

        # last_m Linear + folded last_ln: per-head accumulation against the
        # [H, dh, D] view of w_l (equivalent to the permute-back + [D,D] matmul)
        y = b_l
        for h in range(heads):
            sh = spk_attn[h * Bc:(h + 1) * Bc].reshape(M, dh)
            y = y + jnp.dot(sh, wl_h[h], preferred_element_type=jnp.float32)

        o_ref[:, t] = y.reshape(Bc, L, D)


def _num_core_blocks(batch):
    """Grid size = number of TensorCores (2 on v7x, else 1), clamped to divide B."""
    try:
        kind = jax.devices()[0].device_kind.lower()
    except Exception:
        kind = ""
    n = 2 if "v7" in kind else 1
    while n > 1 and batch % n:
        n -= 1
    return max(n, 1)


def step_spiking_attention_forward(x, w_qkv, b_qkv, wl, bl, *, heads,
                                   core_blocks=None):
    """x: [T, B, L, D] f32 (module layout).  w_qkv: [D, 3D], b_qkv: [1, 3D],
    wl: [D, D], bl: [1, D] (eval-mode BatchNorm already folded in)."""
    T, B, L, D = x.shape
    G = _num_core_blocks(B) if core_blocks is None else core_blocks
    Bc = B // G

    # [B, T, L, D]: one contiguous HBM region per grid block (input and output).
    xb = jnp.transpose(x, (1, 0, 2, 3))

    kernel = functools.partial(_attn_kernel, heads=heads)

    x_spec = pl.BlockSpec((Bc, T, L, D), lambda g: (g, 0, 0, 0))
    out_spec = pl.BlockSpec((Bc, T, L, D), lambda g: (g, 0, 0, 0))
    wqkv_spec = pl.BlockSpec((D, 3 * D), lambda g: (0, 0))
    bqkv_spec = pl.BlockSpec((1, 3 * D), lambda g: (0, 0))
    wl_spec = pl.BlockSpec((D, D), lambda g: (0, 0))
    bl_spec = pl.BlockSpec((1, D), lambda g: (0, 0))

    # NOTE: blocks are ~KiB-scale here; re-derive vmem_limit_bytes only if the
    # per-core block is scaled to production shapes (v7x has 64 MiB physical).
    out = pl.pallas_call(
        kernel,
        out_shape=jax.ShapeDtypeStruct((B, T, L, D), jnp.float32),
        grid_spec=pltpu.PrefetchScalarGridSpec(
            num_scalar_prefetch=0,
            grid=(G,),                     # one step per TensorCore block
            in_specs=[x_spec, wqkv_spec, bqkv_spec, wl_spec, bl_spec],
            out_specs=out_spec,
        ),
        compiler_params=pltpu.CompilerParams(
            dimension_semantics=("parallel",)),   # blocks shard across v7x cores
    )(xb, w_qkv, b_qkv, wl, bl)

    return jnp.transpose(out, (1, 0, 2, 3))       # back to [T, B, L, D]


# ----------------------------------------------------------------------------
# Plain-JAX glue: BN folding + pure-JAX reference for verification
# ----------------------------------------------------------------------------
def fold_bn_into_linear(w, b, bn):
    """Eval-mode BatchNorm2d (over channel dim D) folded into Linear."""
    gamma, beta, rm, rv = bn
    s = gamma / jnp.sqrt(rv + BN_EPS)
    w_eff = w * s[None, :]
    b_eff = b * s + (beta - rm * s)
    return w_eff, b_eff.reshape(1, -1)


def _lif_ref(x):
    T = x.shape[0]
    mem = x[0]
    spk = (mem > THRESH).astype(jnp.float32)
    outs = [spk]
    for i in range(1, T):
        mem = mem * DECAY * (1.0 - spk) + x[i]
        spk = (mem > THRESH).astype(jnp.float32)
        outs.append(spk)
    return jnp.stack(outs, 0)


def _bn_eval_ref(z, bn):
    gamma, beta, rm, rv = bn
    return (z - rm) / jnp.sqrt(rv + BN_EPS) * gamma + beta


def ref_forward(x, p, heads):
    T, B, L, D = x.shape
    dh = D // heads
    s0 = _lif_ref(x)

    def branch(w, b, bn):
        return _lif_ref(_bn_eval_ref(s0 @ w + b, bn))

    qs = branch(p["wq"], p["bq"], p["bn_q"])
    ks = branch(p["wk"], p["bk"], p["bn_k"])
    vs = branch(p["wv"], p["bv"], p["bn_v"])

    qh = qs.reshape(T, B, L, heads, dh).transpose(0, 1, 3, 2, 4)
    kh = ks.reshape(T, B, L, heads, dh).transpose(0, 1, 3, 2, 4)
    vh = vs.reshape(T, B, L, heads, dh).transpose(0, 1, 3, 2, 4)

    attn = jnp.einsum("tbhld,tbhmd->tbhlm", qh, kh)
    mask = jnp.tril(jnp.ones((L, L), jnp.float32))
    attn = attn * mask
    o = jnp.einsum("tbhlm,tbhmd->tbhld", attn, vh)
    o = o.transpose(0, 1, 3, 2, 4).reshape(T, B, L, D)

    sa = _lif_ref(o)
    y = sa @ p["wl"] + p["bl"]
    return _bn_eval_ref(y, p["bn_last"])


# ----------------------------------------------------------------------------
# Main
# ----------------------------------------------------------------------------
if __name__ == "__main__":
    # TODO(synk): only the eval/inference path of PTNorm (BatchNorm w/ running
    # stats) and attention_mask=None are implemented; training-mode LN/BN blend
    # and fire-rate bookkeeping are Python-side stateful logic, not kernel math.
    T, B, L, D, H = 4, 2, 8, 32, 4   # dim=32, heads=4, seq_len=8, T=4

    key = jax.random.PRNGKey(0)
    keys = jax.random.split(key, 10)
    x = jax.random.normal(keys[0], (T, B, L, D), jnp.float32)

    def linear_params(k):
        k1, k2 = jax.random.split(k)
        w = jax.random.normal(k1, (D, D), jnp.float32) / jnp.sqrt(jnp.float32(D))
        b = jax.random.normal(k2, (D,), jnp.float32) * 0.1
        return w, b

    def bn_params(k):
        k1, k2, k3, k4 = jax.random.split(k, 4)
        gamma = jax.random.uniform(k1, (D,), jnp.float32, 0.5, 1.5)
        beta = jax.random.normal(k2, (D,), jnp.float32) * 0.1
        rm = jax.random.normal(k3, (D,), jnp.float32) * 0.1
        rv = jax.random.uniform(k4, (D,), jnp.float32, 0.5, 1.5)
        return gamma, beta, rm, rv

    wq, bq = linear_params(keys[1]); bn_q = bn_params(keys[2])
    wk, bk = linear_params(keys[3]); bn_k = bn_params(keys[4])
    wv, bv = linear_params(keys[5]); bn_v = bn_params(keys[6])
    wl, bl = linear_params(keys[7]); bn_last = bn_params(keys[8])

    params = dict(wq=wq, bq=bq, bn_q=bn_q, wk=wk, bk=bk, bn_k=bn_k,
                  wv=wv, bv=bv, bn_v=bn_v, wl=wl, bl=bl, bn_last=bn_last)

    # Fold eval-BN into the linears, then fuse q|k|v into one [D, 3D] matmul.
    wq_f, bq_f = fold_bn_into_linear(wq, bq, bn_q)
    wk_f, bk_f = fold_bn_into_linear(wk, bk, bn_k)
    wv_f, bv_f = fold_bn_into_linear(wv, bv, bn_v)
    wl_f, bl_f = fold_bn_into_linear(wl, bl, bn_last)
    w_qkv = jnp.concatenate([wq_f, wk_f, wv_f], axis=1)   # [D, 3D]
    b_qkv = jnp.concatenate([bq_f, bk_f, bv_f], axis=1)   # [1, 3D]

    out = step_spiking_attention_forward(x, w_qkv, b_qkv, wl_f, bl_f, heads=H)
    out = jax.block_until_ready(out)

    ref = ref_forward(x, params, H)
    err = float(jnp.max(jnp.abs(out - ref)))
    assert out.shape == (T, B, L, D), out.shape
    assert err < 1e-3, f"max abs err = {err}"
    print("KERNEL_OK")
</pallas_src>

<mosaic_0001>
module attributes {stable_mosaic.version = 11 : i64} {
  func.func @_attn_kernel(%arg0: i32, %arg1: memref<2x4x8x32xf32, #tpu.memory_space<vmem>>, %arg2: memref<32x96xf32, #tpu.memory_space<vmem>>, %arg3: memref<1x96xf32, #tpu.memory_space<vmem>>, %arg4: memref<32x32xf32, #tpu.memory_space<vmem>>, %arg5: memref<1x32xf32, #tpu.memory_space<vmem>>, %arg6: memref<2x4x8x32xf32, #tpu.memory_space<vmem>>) attributes {dimension_semantics = [#tpu.dimension_semantics<parallel>], iteration_bounds = array<i64: 1>, scalar_prefetch = 0 : i64, scratch_operands = 0 : i64, tpu.core_type = #tpu.core_type<tc>, window_params = [{transform_indices = @transform_0, window_bounds = array<i64: 2, 4, 8, 32>}, {pipeline_mode = #tpu.pipeline_mode<synchronous>, transform_indices = @transform_1, window_bounds = array<i64: 32, 96>}, {pipeline_mode = #tpu.pipeline_mode<synchronous>, transform_indices = @transform_2, window_bounds = array<i64: 1, 96>}, {pipeline_mode = #tpu.pipeline_mode<synchronous>, transform_indices = @transform_3, window_bounds = array<i64: 32, 32>}, {pipeline_mode = #tpu.pipeline_mode<synchronous>, transform_indices = @transform_4, window_bounds = array<i64: 1, 32>}, {transform_indices = @transform_5, window_bounds = array<i64: 2, 4, 8, 32>}]} {
    %c0 = arith.constant 0 : index
    %c0_0 = arith.constant 0 : index
    %0 = vector.load %arg2[%c0, %c0_0] : memref<32x96xf32, #tpu.memory_space<vmem>>, vector<32x96xf32>
    %c0_1 = arith.constant 0 : index
    %c0_2 = arith.constant 0 : index
    %1 = vector.load %arg4[%c0_1, %c0_2] : memref<32x32xf32, #tpu.memory_space<vmem>>, vector<32x32xf32>
    %2 = vector.extract_strided_slice %1 {offsets = [0, 0], sizes = [8, 32], strides = [1, 1]} : vector<32x32xf32> to vector<8x32xf32>
    %3 = vector.extract_strided_slice %1 {offsets = [8, 0], sizes = [8, 32], strides = [1, 1]} : vector<32x32xf32> to vector<8x32xf32>
    %4 = vector.extract_strided_slice %1 {offsets = [16, 0], sizes = [8, 32], strides = [1, 1]} : vector<32x32xf32> to vector<8x32xf32>
    %5 = vector.extract_strided_slice %1 {offsets = [24, 0], sizes = [8, 32], strides = [1, 1]} : vector<32x32xf32> to vector<8x32xf32>
    %c0_3 = arith.constant 0 : index
    %c0_4 = arith.constant 0 : index
    %6 = vector.load %arg3[%c0_3, %c0_4] : memref<1x96xf32, #tpu.memory_space<vmem>>, vector<1x96xf32>
    %7 = vector.shape_cast %6 : vector<1x96xf32> to vector<1x96xf32>
    %8 = vector.broadcast %7 : vector<1x96xf32> to vector<16x96xf32>
    %c0_5 = arith.constant 0 : index
    %c0_6 = arith.constant 0 : index
    %9 = vector.load %arg5[%c0_5, %c0_6] : memref<1x32xf32, #tpu.memory_space<vmem>>, vector<1x32xf32>
    %10 = vector.shape_cast %9 : vector<1x32xf32> to vector<1x32xf32>
    %11 = vector.broadcast %10 : vector<1x32xf32> to vector<16x32xf32>
    %12 = tpu.iota {dimensions = array<i32: 0>} : vector<8x8xi32>
    %13 = tpu.iota {dimensions = array<i32: 1>} : vector<8x8xi32>
    %14 = arith.cmpi sge, %12, %13 : vector<8x8xi32>
    %15 = vector.shape_cast %14 : vector<8x8xi1> to vector<1x8x8xi1>
    %c0_7 = arith.constant 0 : index
    %c0_8 = arith.constant 0 : index
    %c0_9 = arith.constant 0 : index
    %c0_10 = arith.constant 0 : index
    %16 = vector.load %arg1[%c0_7, %c0_8, %c0_9, %c0_10] : memref<2x4x8x32xf32, #tpu.memory_space<vmem>>, vector<2x1x8x32xf32>
    %17 = vector.shape_cast %16 : vector<2x1x8x32xf32> to vector<2x8x32xf32>
    %18 = vector.shape_cast %17 : vector<2x8x32xf32> to vector<16x32xf32>
    %cst = arith.constant 5.000000e-01 : f32
    %19 = vector.broadcast %cst : f32 to vector<16x32xf32>
    %20 = arith.cmpf ogt, %18, %19 : vector<16x32xf32>
    %21 = arith.extui %20 : vector<16x32xi1> to vector<16x32xi32>
    %22 = arith.sitofp %21 : vector<16x32xi32> to vector<16x32xf32>
    %cst_11 = arith.constant dense<0.000000e+00> : vector<16x96xf32>
    %23 = tpu.matmul %22, %0, %cst_11 {dimension_numbers = #tpu.dot_dimension_numbers<[1], [0], [0], [1], [0, 0, 1, 1], [], []>} : vector<16x32xf32>, vector<32x96xf32>, vector<16x96xf32> -> vector<16x96xf32>
    %24 = arith.addf %23, %8 : vector<16x96xf32>
    %cst_12 = arith.constant 5.000000e-01 : f32
    %25 = vector.broadcast %cst_12 : f32 to vector<16x96xf32>
    %26 = arith.cmpf ogt, %24, %25 : vector<16x96xf32>
    %27 = arith.extui %26 : vector<16x96xi1> to vector<16x96xi32>
    %28 = arith.sitofp %27 : vector<16x96xi32> to vector<16x96xf32>
    %29 = vector.shape_cast %28 : vector<16x96xf32> to vector<2x8x96xf32>
    %30 = vector.extract_strided_slice %29 {offsets = [0, 0, 0], sizes = [2, 8, 8], strides = [1, 1, 1]} : vector<2x8x96xf32> to vector<2x8x8xf32>
    %31 = vector.extract_strided_slice %29 {offsets = [0, 0, 8], sizes = [2, 8, 8], strides = [1, 1, 1]} : vector<2x8x96xf32> to vector<2x8x8xf32>
    %32 = vector.extract_strided_slice %29 {offsets = [0, 0, 16], sizes = [2, 8, 8], strides = [1, 1, 1]} : vector<2x8x96xf32> to vector<2x8x8xf32>
    %33 = vector.extract_strided_slice %29 {offsets = [0, 0, 24], sizes = [2, 8, 8], strides = [1, 1, 1]} : vector<2x8x96xf32> to vector<2x8x8xf32>
    %34 = tpu.concatenate %30, %31, %32, %33 in 0 : vector<2x8x8xf32>, vector<2x8x8xf32>, vector<2x8x8xf32>, vector<2x8x8xf32> -> vector<8x8x8xf32>
    %35 = vector.extract_strided_slice %29 {offsets = [0, 0, 32], sizes = [2, 8, 8], strides = [1, 1, 1]} : vector<2x8x96xf32> to vector<2x8x8xf32>
    %36 = vector.extract_strided_slice %29 {offsets = [0, 0, 40], sizes = [2, 8, 8], strides = [1, 1, 1]} : vector<2x8x96xf32> to vector<2x8x8xf32>
    %37 = vector.extract_strided_slice %29 {offsets = [0, 0, 48], sizes = [2, 8, 8], strides = [1, 1, 1]} : vector<2x8x96xf32> to vector<2x8x8xf32>
    %38 = vector.extract_strided_slice %29 {offsets = [0, 0, 56], sizes = [2, 8, 8], strides = [1, 1, 1]} : vector<2x8x96xf32> to vector<2x8x8xf32>
    %39 = tpu.concatenate %35, %36, %37, %38 in 0 : vector<2x8x8xf32>, vector<2x8x8xf32>, vector<2x8x8xf32>, vector<2x8x8xf32> -> vector<8x8x8xf32>
    %40 = vector.extract_strided_slice %29 {offsets = [0, 0, 64], sizes = [2, 8, 8], strides = [1, 1, 1]} : vector<2x8x96xf32> to vector<2x8x8xf32>
    %41 = vector.extract_strided_slice %29 {offsets = [0, 0, 72], sizes = [2, 8, 8], strides = [1, 1, 1]} : vector<2x8x96xf32> to vector<2x8x8xf32>
    %42 = vector.extract_strided_slice %29 {offsets = [0, 0, 80], sizes = [2, 8, 8], strides = [1, 1, 1]} : vector<2x8x96xf32> to vector<2x8x8xf32>
    %43 = vector.extract_strided_slice %29 {offsets = [0, 0, 88], sizes = [2, 8, 8], strides = [1, 1, 1]} : vector<2x8x96xf32> to vector<2x8x8xf32>
    %44 = tpu.concatenate %40, %41, %42, %43 in 0 : vector<2x8x8xf32>, vector<2x8x8xf32>, vector<2x8x8xf32>, vector<2x8x8xf32> -> vector<8x8x8xf32>
    "tpu.trace_start"() <{level = 10 : i32, message = "gld,gmd->glm"}> : () -> ()
    %cst_13 = arith.constant dense<0.000000e+00> : vector<8x8x8xf32>
    %45 = tpu.matmul %34, %39, %cst_13 {dimension_numbers = #tpu.dot_dimension_numbers<[2], [2], [1], [1], [0, 0, 0, 1, 1, 1], [0], [0]>} : vector<8x8x8xf32>, vector<8x8x8xf32>, vector<8x8x8xf32> -> vector<8x8x8xf32>
    %cst_14 = arith.constant 0.000000e+00 : f32
    "tpu.trace_stop"() : () -> ()
    %46 = vector.shape_cast %15 : vector<1x8x8xi1> to vector<1x8x8xi1>
    %47 = vector.broadcast %46 : vector<1x8x8xi1> to vector<8x8x8xi1>
    %48 = vector.broadcast %cst_14 : f32 to vector<8x8x8xf32>
    %49 = arith.select %47, %45, %48 : vector<8x8x8xi1>, vector<8x8x8xf32>
    "tpu.trace_start"() <{level = 10 : i32, message = "glm,gmd->gld"}> : () -> ()
    %cst_15 = arith.constant dense<0.000000e+00> : vector<8x8x8xf32>
    %50 = tpu.matmul %49, %44, %cst_15 {dimension_numbers = #tpu.dot_dimension_numbers<[2], [1], [1], [2], [0, 0, 0, 1, 1, 2], [0], [0]>} : vector<8x8x8xf32>, vector<8x8x8xf32>, vector<8x8x8xf32> -> vector<8x8x8xf32>
    %cst_16 = arith.constant 5.000000e-01 : f32
    "tpu.trace_stop"() : () -> ()
    %51 = vector.broadcast %cst_16 : f32 to vector<8x8x8xf32>
    %52 = arith.cmpf ogt, %50, %51 : vector<8x8x8xf32>
    %53 = arith.extui %52 : vector<8x8x8xi1> to vector<8x8x8xi32>
    %54 = arith.sitofp %53 : vector<8x8x8xi32> to vector<8x8x8xf32>
    %55 = vector.extract_strided_slice %54 {offsets = [0, 0, 0], sizes = [2, 8, 8], strides = [1, 1, 1]} : vector<8x8x8xf32> to vector<2x8x8xf32>
    %56 = vector.shape_cast %55 : vector<2x8x8xf32> to vector<16x8xf32>
    %cst_17 = arith.constant dense<0.000000e+00> : vector<16x32xf32>
    %57 = tpu.matmul %56, %2, %cst_17 {dimension_numbers = #tpu.dot_dimension_numbers<[1], [0], [0], [1], [0, 0, 1, 1], [], []>} : vector<16x8xf32>, vector<8x32xf32>, vector<16x32xf32> -> vector<16x32xf32>
    %58 = arith.addf %11, %57 : vector<16x32xf32>
    %59 = vector.extract_strided_slice %54 {offsets = [2, 0, 0], sizes = [2, 8, 8], strides = [1, 1, 1]} : vector<8x8x8xf32> to vector<2x8x8xf32>
    %60 = vector.shape_cast %59 : vector<2x8x8xf32> to vector<16x8xf32>
    %cst_18 = arith.constant dense<0.000000e+00> : vector<16x32xf32>
    %61 = tpu.matmul %60, %3, %cst_18 {dimension_numbers = #tpu.dot_dimension_numbers<[1], [0], [0], [1], [0, 0, 1, 1], [], []>} : vector<16x8xf32>, vector<8x32xf32>, vector<16x32xf32> -> vector<16x32xf32>
    %62 = arith.addf %58, %61 : vector<16x32xf32>
    %63 = vector.extract_strided_slice %54 {offsets = [4, 0, 0], sizes = [2, 8, 8], strides = [1, 1, 1]} : vector<8x8x8xf32> to vector<2x8x8xf32>
    %64 = vector.shape_cast %63 : vector<2x8x8xf32> to vector<16x8xf32>
    %cst_19 = arith.constant dense<0.000000e+00> : vector<16x32xf32>
    %65 = tpu.matmul %64, %4, %cst_19 {dimension_numbers = #tpu.dot_dimension_numbers<[1], [0], [0], [1], [0, 0, 1, 1], [], []>} : vector<16x8xf32>, vector<8x32xf32>, vector<16x32xf32> -> vector<16x32xf32>
    %66 = arith.addf %62, %65 : vector<16x32xf32>
    %67 = vector.extract_strided_slice %54 {offsets = [6, 0, 0], sizes = [2, 8, 8], strides = [1, 1, 1]} : vector<8x8x8xf32> to vector<2x8x8xf32>
    %68 = vector.shape_cast %67 : vector<2x8x8xf32> to vector<16x8xf32>
    %cst_20 = arith.constant dense<0.000000e+00> : vector<16x32xf32>
    %69 = tpu.matmul %68, %5, %cst_20 {dimension_numbers = #tpu.dot_dimension_numbers<[1], [0], [0], [1], [0, 0, 1, 1], [], []>} : vector<16x8xf32>, vector<8x32xf32>, vector<16x32xf32> -> vector<16x32xf32>
    %70 = arith.addf %66, %69 : vector<16x32xf32>
    %71 = vector.shape_cast %70 : vector<16x32xf32> to vector<2x8x32xf32>
    %c0_21 = arith.constant 0 : index
    %c0_22 = arith.constant 0 : index
    %c0_23 = arith.constant 0 : index
    %c0_24 = arith.constant 0 : index
    %72 = vector.load %arg6[%c0_21, %c0_22, %c0_23, %c0_24] : memref<2x4x8x32xf32, #tpu.memory_space<vmem>>, vector<2x1x8x32xf32>
    %73 = vector.shape_cast %72 : vector<2x1x8x32xf32> to vector<2x8x32xf32>
    %74 = vector.shape_cast %71 : vector<2x8x32xf32> to vector<2x1x8x32xf32>
    tpu.vector_store %arg6[%c0_21, %c0_22, %c0_23, %c0_24], %74 {strides = array<i32>} : memref<2x4x8x32xf32, #tpu.memory_space<vmem>>, vector<2x1x8x32xf32>,
    %c0_25 = arith.constant 0 : index
    %c1 = arith.constant 1 : index
    %c0_26 = arith.constant 0 : index
    %c0_27 = arith.constant 0 : index
    %75 = vector.load %arg1[%c0_25, %c1, %c0_26, %c0_27] : memref<2x4x8x32xf32, #tpu.memory_space<vmem>>, vector<2x1x8x32xf32>
    %76 = vector.shape_cast %75 : vector<2x1x8x32xf32> to vector<2x8x32xf32>
    %77 = vector.shape_cast %76 : vector<2x8x32xf32> to vector<16x32xf32>
    %cst_28 = arith.constant 1.000000e+00 : f32
    %78 = vector.broadcast %cst_28 : f32 to vector<16x32xf32>
    %79 = arith.subf %78, %22 : vector<16x32xf32>
    %cst_29 = arith.constant 2.500000e-01 : f32
    %80 = vector.broadcast %cst_29 : f32 to vector<16x32xf32>
    %81 = arith.mulf %80, %79 : vector<16x32xf32>
    %82 = arith.mulf %18, %81 : vector<16x32xf32>
    %83 = arith.addf %82, %77 : vector<16x32xf32>
    %cst_30 = arith.constant 5.000000e-01 : f32
    %84 = vector.broadcast %cst_30 : f32 to vector<16x32xf32>
    %85 = arith.cmpf ogt, %83, %84 : vector<16x32xf32>
    %86 = arith.extui %85 : vector<16x32xi1> to vector<16x32xi32>
    %87 = arith.sitofp %86 : vector<16x32xi32> to vector<16x32xf32>
    %cst_31 = arith.constant dense<0.000000e+00> : vector<16x96xf32>
    %88 = tpu.matmul %87, %0, %cst_31 {dimension_numbers = #tpu.dot_dimension_numbers<[1], [0], [0], [1], [0, 0, 1, 1], [], []>} : vector<16x32xf32>, vector<32x96xf32>, vector<16x96xf32> -> vector<16x96xf32>
    %89 = arith.addf %88, %8 : vector<16x96xf32>
    %cst_32 = arith.constant 1.000000e+00 : f32
    %90 = vector.broadcast %cst_32 : f32 to vector<16x96xf32>
    %91 = arith.subf %90, %28 : vector<16x96xf32>
    %cst_33 = arith.constant 2.500000e-01 : f32
    %92 = vector.broadcast %cst_33 : f32 to vector<16x96xf32>
    %93 = arith.mulf %92, %91 : vector<16x96xf32>
    %94 = arith.mulf %24, %93 : vector<16x96xf32>
    %95 = arith.addf %94, %89 : vector<16x96xf32>
    %cst_34 = arith.constant 5.000000e-01 : f32
    %96 = vector.broadcast %cst_34 : f32 to vector<16x96xf32>
    %97 = arith.cmpf ogt, %95, %96 : vector<16x96xf32>
    %98 = arith.extui %97 : vector<16x96xi1> to vector<16x96xi32>
    %99 = arith.sitofp %98 : vector<16x96xi32> to vector<16x96xf32>
    %100 = vector.shape_cast %99 : vector<16x96xf32> to vector<2x8x96xf32>
    %101 = vector.extract_strided_slice %100 {offsets = [0, 0, 0], sizes = [2, 8, 8], strides = [1, 1, 1]} : vector<2x8x96xf32> to vector<2x8x8xf32>
    %102 = vector.extract_strided_slice %100 {offsets = [0, 0, 8], sizes = [2, 8, 8], strides = [1, 1, 1]} : vector<2x8x96xf32> to vector<2x8x8xf32>
    %103 = vector.extract_strided_slice %100 {offsets = [0, 0, 16], sizes = [2, 8, 8], strides = [1, 1, 1]} : vector<2x8x96xf32> to vector<2x8x8xf32>
    %104 = vector.extract_strided_slice %100 {offsets = [0, 0, 24], sizes = [2, 8, 8], strides = [1, 1, 1]} : vector<2x8x96xf32> to vector<2x8x8xf32>
    %105 = tpu.concatenate %101, %102, %103, %104 in 0 : vector<2x8x8xf32>, vector<2x8x8xf32>, vector<2x8x8xf32>, vector<2x8x8xf32> -> vector<8x8x8xf32>
    %106 = vector.extract_strided_slice %100 {offsets = [0, 0, 32], sizes = [2, 8, 8], strides = [1, 1, 1]} : vector<2x8x96xf32> to vector<2x8x8xf32>
    %107 = vector.extract_strided_slice %100 {offsets = [0, 0, 40], sizes = [2, 8, 8], strides = [1, 1, 1]} : vector<2x8x96xf32> to vector<2x8x8xf32>
    %108 = vector.extract_strided_slice %100 {offsets = [0, 0, 48], sizes = [2, 8, 8], strides = [1, 1, 1]} : vector<2x8x96xf32> to vector<2x8x8xf32>
    %109 = vector.extract_strided_slice %100 {offsets = [0, 0, 56], sizes = [2, 8, 8], strides = [1, 1, 1]} : vector<2x8x96xf32> to vector<2x8x8xf32>
    %110 = tpu.concatenate %106, %107, %108, %109 in 0 : vector<2x8x8xf32>, vector<2x8x8xf32>, vector<2x8x8xf32>, vector<2x8x8xf32> -> vector<8x8x8xf32>
    %111 = vector.extract_strided_slice %100 {offsets = [0, 0, 64], sizes = [2, 8, 8], strides = [1, 1, 1]} : vector<2x8x96xf32> to vector<2x8x8xf32>
    %112 = vector.extract_strided_slice %100 {offsets = [0, 0, 72], sizes = [2, 8, 8], strides = [1, 1, 1]} : vector<2x8x96xf32> to vector<2x8x8xf32>
    %113 = vector.extract_strided_slice %100 {offsets = [0, 0, 80], sizes = [2, 8, 8], strides = [1, 1, 1]} : vector<2x8x96xf32> to vector<2x8x8xf32>
    %114 = vector.extract_strided_slice %100 {offsets = [0, 0, 88], sizes = [2, 8, 8], strides = [1, 1, 1]} : vector<2x8x96xf32> to vector<2x8x8xf32>
    %115 = tpu.concatenate %111, %112, %113, %114 in 0 : vector<2x8x8xf32>, vector<2x8x8xf32>, vector<2x8x8xf32>, vector<2x8x8xf32> -> vector<8x8x8xf32>
    "tpu.trace_start"() <{level = 10 : i32, message = "gld,gmd->glm"}> : () -> ()
    %cst_35 = arith.constant dense<0.000000e+00> : vector<8x8x8xf32>
    %116 = tpu.matmul %105, %110, %cst_35 {dimension_numbers = #tpu.dot_dimension_numbers<[2], [2], [1], [1], [0, 0, 0, 1, 1, 1], [0], [0]>} : vector<8x8x8xf32>, vector<8x8x8xf32>, vector<8x8x8xf32> -> vector<8x8x8xf32>
    %cst_36 = arith.constant 0.000000e+00 : f32
    "tpu.trace_stop"() : () -> ()
    %117 = vector.shape_cast %15 : vector<1x8x8xi1> to vector<1x8x8xi1>
    %118 = vector.broadcast %117 : vector<1x8x8xi1> to vector<8x8x8xi1>
    %119 = vector.broadcast %cst_36 : f32 to vector<8x8x8xf32>
    %120 = arith.select %118, %116, %119 : vector<8x8x8xi1>, vector<8x8x8xf32>
    "tpu.trace_start"() <{level = 10 : i32, message = "glm,gmd->gld"}> : () -> ()
    %cst_37 = arith.constant dense<0.000000e+00> : vector<8x8x8xf32>
    %121 = tpu.matmul %120, %115, %cst_37 {dimension_numbers = #tpu.dot_dimension_numbers<[2], [1], [1], [2], [0, 0, 0, 1, 1, 2], [0], [0]>} : vector<8x8x8xf32>, vector<8x8x8xf32>, vector<8x8x8xf32> -> vector<8x8x8xf32>
    "tpu.trace_stop"() : () -> ()
    %cst_38 = arith.constant 1.000000e+00 : f32
    %122 = vector.broadcast %cst_38 : f32 to vector<8x8x8xf32>
    %123 = arith.subf %122, %54 : vector<8x8x8xf32>
    %cst_39 = arith.constant 2.500000e-01 : f32
    %124 = vector.broadcast %cst_39 : f32 to vector<8x8x8xf32>
    %125 = arith.mulf %124, %123 : vector<8x8x8xf32>
    %126 = arith.mulf %50, %125 : vector<8x8x8xf32>
    %127 = arith.addf %126, %121 : vector<8x8x8xf32>
    %cst_40 = arith.constant 5.000000e-01 : f32
    %128 = vector.broadcast %cst_40 : f32 to vector<8x8x8xf32>
    %129 = arith.cmpf ogt, %127, %128 : vector<8x8x8xf32>
    %130 = arith.extui %129 : vector<8x8x8xi1> to vector<8x8x8xi32>
    %131 = arith.sitofp %130 : vector<8x8x8xi32> to vector<8x8x8xf32>
    %132 = vector.extract_strided_slice %131 {offsets = [0, 0, 0], sizes = [2, 8, 8], strides = [1, 1, 1]} : vector<8x8x8xf32> to vector<2x8x8xf32>
    %133 = vector.shape_cast %132 : vector<2x8x8xf32> to vector<16x8xf32>
    %cst_41 = arith.constant dense<0.000000e+00> : vector<16x32xf32>
    %134 = tpu.matmul %133, %2, %cst_41 {dimension_numbers = #tpu.dot_dimension_numbers<[1], [0], [0], [1], [0, 0, 1, 1], [], []>} : vector<16x8xf32>, vector<8x32xf32>, vector<16x32xf32> -> vector<16x32xf32>
    %135 = arith.addf %11, %134 : vector<16x32xf32>
    %136 = vector.extract_strided_slice %131 {offsets = [2, 0, 0], sizes = [2, 8, 8], strides = [1, 1, 1]} : vector<8x8x8xf32> to vector<2x8x8xf32>
    %137 = vector.shape_cast %136 : vector<2x8x8xf32> to vector<16x8xf32>
    %cst_42 = arith.constant dense<0.000000e+00> : vector<16x32xf32>
    %138 = tpu.matmul %137, %3, %cst_42 {dimension_numbers = #tpu.dot_dimension_numbers<[1], [0], [0], [1], [0, 0, 1, 1], [], []>} : vector<16x8xf32>, vector<8x32xf32>, vector<16x32xf32> -> vector<16x32xf32>
    %139 = arith.addf %135, %138 : vector<16x32xf32>
    %140 = vector.extract_strided_slice %131 {offsets = [4, 0, 0], sizes = [2, 8, 8], strides = [1, 1, 1]} : vector<8x8x8xf32> to vector<2x8x8xf32>
    %141 = vector.shape_cast %140 : vector<2x8x8xf32> to vector<16x8xf32>
    %cst_43 = arith.constant dense<0.000000e+00> : vector<16x32xf32>
    %142 = tpu.matmul %141, %4, %cst_43 {dimension_numbers = #tpu.dot_dimension_numbers<[1], [0], [0], [1], [0, 0, 1, 1], [], []>} : vector<16x8xf32>, vector<8x32xf32>, vector<16x32xf32> -> vector<16x32xf32>
    %143 = arith.addf %139, %142 : vector<16x32xf32>
    %144 = vector.extract_strided_slice %131 {offsets = [6, 0, 0], sizes = [2, 8, 8], strides = [1, 1, 1]} : vector<8x8x8xf32> to vector<2x8x8xf32>
    %145 = vector.shape_cast %144 : vector<2x8x8xf32> to vector<16x8xf32>
    %cst_44 = arith.constant dense<0.000000e+00> : vector<16x32xf32>
    %146 = tpu.matmul %145, %5, %cst_44 {dimension_numbers = #tpu.dot_dimension_numbers<[1], [0], [0], [1], [0, 0, 1, 1], [], []>} : vector<16x8xf32>, vector<8x32xf32>, vector<16x32xf32> -> vector<16x32xf32>
    %147 = arith.addf %143, %146 : vector<16x32xf32>
    %148 = vector.shape_cast %147 : vector<16x32xf32> to vector<2x8x32xf32>
    %c0_45 = arith.constant 0 : index
    %c1_46 = arith.constant 1 : index
    %c0_47 = arith.constant 0 : index
    %c0_48 = arith.constant 0 : index
    %149 = vector.load %arg6[%c0_45, %c1_46, %c0_47, %c0_48] : memref<2x4x8x32xf32, #tpu.memory_space<vmem>>, vector<2x1x8x32xf32>
    %150 = vector.shape_cast %149 : vector<2x1x8x32xf32> to vector<2x8x32xf32>
    %151 = vector.shape_cast %148 : vector<2x8x32xf32> to vector<2x1x8x32xf32>
    tpu.vector_store %arg6[%c0_45, %c1_46, %c0_47, %c0_48], %151 {strides = array<i32>} : memref<2x4x8x32xf32, #tpu.memory_space<vmem>>, vector<2x1x8x32xf32>,
    %c0_49 = arith.constant 0 : index
    %c2 = arith.constant 2 : index
    %c0_50 = arith.constant 0 : index
    %c0_51 = arith.constant 0 : index
    %152 = vector.load %arg1[%c0_49, %c2, %c0_50, %c0_51] : memref<2x4x8x32xf32, #tpu.memory_space<vmem>>, vector<2x1x8x32xf32>
    %153 = vector.shape_cast %152 : vector<2x1x8x32xf32> to vector<2x8x32xf32>
    %154 = vector.shape_cast %153 : vector<2x8x32xf32> to vector<16x32xf32>
    %cst_52 = arith.constant 1.000000e+00 : f32
    %155 = vector.broadcast %cst_52 : f32 to vector<16x32xf32>
    %156 = arith.subf %155, %87 : vector<16x32xf32>
    %cst_53 = arith.constant 2.500000e-01 : f32
    %157 = vector.broadcast %cst_53 : f32 to vector<16x32xf32>
    %158 = arith.mulf %157, %156 : vector<16x32xf32>
    %159 = arith.mulf %83, %158 : vector<16x32xf32>
    %160 = arith.addf %159, %154 : vector<16x32xf32>
    %cst_54 = arith.constant 5.000000e-01 : f32
    %161 = vector.broadcast %cst_54 : f32 to vector<16x32xf32>
    %162 = arith.cmpf ogt, %160, %161 : vector<16x32xf32>
    %163 = arith.extui %162 : vector<16x32xi1> to vector<16x32xi32>
    %164 = arith.sitofp %163 : vector<16x32xi32> to vector<16x32xf32>
    %cst_55 = arith.constant dense<0.000000e+00> : vector<16x96xf32>
    %165 = tpu.matmul %164, %0, %cst_55 {dimension_numbers = #tpu.dot_dimension_numbers<[1], [0], [0], [1], [0, 0, 1, 1], [], []>} : vector<16x32xf32>, vector<32x96xf32>, vector<16x96xf32> -> vector<16x96xf32>
    %166 = arith.addf %165, %8 : vector<16x96xf32>
    %cst_56 = arith.constant 1.000000e+00 : f32
    %167 = vector.broadcast %cst_56 : f32 to vector<16x96xf32>
    %168 = arith.subf %167, %99 : vector<16x96xf32>
    %cst_57 = arith.constant 2.500000e-01 : f32
    %169 = vector.broadcast %cst_57 : f32 to vector<16x96xf32>
    %170 = arith.mulf %169, %168 : vector<16x96xf32>
    %171 = arith.mulf %95, %170 : vector<16x96xf32>
    %172 = arith.addf %171, %166 : vector<16x96xf32>
    %cst_58 = arith.constant 5.000000e-01 : f32
    %173 = vector.broadcast %cst_58 : f32 to vector<16x96xf32>
    %174 = arith.cmpf ogt, %172, %173 : vector<16x96xf32>
    %175 = arith.extui %174 : vector<16x96xi1> to vector<16x96xi32>
    %176 = arith.sitofp %175 : vector<16x96xi32> to vector<16x96xf32>
    %177 = vector.shape_cast %176 : vector<16x96xf32> to vector<2x8x96xf32>
    %178 = vector.extract_strided_slice %177 {offsets = [0, 0, 0], sizes = [2, 8, 8], strides = [1, 1, 1]} : vector<2x8x96xf32> to vector<2x8x8xf32>
    %179 = vector.extract_strided_slice %177 {offsets = [0, 0, 8], sizes = [2, 8, 8], strides = [1, 1, 1]} : vector<2x8x96xf32> to vector<2x8x8xf32>
    %180 = vector.extract_strided_slice %177 {offsets = [0, 0, 16], sizes = [2, 8, 8], strides = [1, 1, 1]} : vector<2x8x96xf32> to vector<2x8x8xf32>
    %181 = vector.extract_strided_slice %177 {offsets = [0, 0, 24], sizes = [2, 8, 8], strides = [1, 1, 1]} : vector<2x8x96xf32> to vector<2x8x8xf32>
    %182 = tpu.concatenate %178, %179, %180, %181 in 0 : vector<2x8x8xf32>, vector<2x8x8xf32>, vector<2x8x8xf32>, vector<2x8x8xf32> -> vector<8x8x8xf32>
    %183 = vector.extract_strided_slice %177 {offsets = [0, 0, 32], sizes = [2, 8, 8], strides = [1, 1, 1]} : vector<2x8x96xf32> to vector<2x8x8xf32>
    %184 = vector.extract_strided_slice %177 {offsets = [0, 0, 40], sizes = [2, 8, 8], strides = [1, 1, 1]} : vector<2x8x96xf32> to vector<2x8x8xf32>
    %185 = vector.extract_strided_slice %177 {offsets = [0, 0, 48], sizes = [2, 8, 8], strides = [1, 1, 1]} : vector<2x8x96xf32> to vector<2x8x8xf32>
    %186 = vector.extract_strided_slice %177 {offsets = [0, 0, 56], sizes = [2, 8, 8], strides = [1, 1, 1]} : vector<2x8x96xf32> to vector<2x8x8xf32>
    %187 = tpu.concatenate %183, %184, %185, %186 in 0 : vector<2x8x8xf32>, vector<2x8x8xf32>, vector<2x8x8xf32>, vector<2x8x8xf32> -> vector<8x8x8xf32>
    %188 = vector.extract_strided_slice %177 {offsets = [0, 0, 64], sizes = [2, 8, 8], strides = [1, 1, 1]} : vector<2x8x96xf32> to vector<2x8x8xf32>
    %189 = vector.extract_strided_slice %177 {offsets = [0, 0, 72], sizes = [2, 8, 8], strides = [1, 1, 1]} : vector<2x8x96xf32> to vector<2x8x8xf32>
    %190 = vector.extract_strided_slice %177 {offsets = [0, 0, 80], sizes = [2, 8, 8], strides = [1, 1, 1]} : vector<2x8x96xf32> to vector<2x8x8xf32>
    %191 = vector.extract_strided_slice %177 {offsets = [0, 0, 88], sizes = [2, 8, 8], strides = [1, 1, 1]} : vector<2x8x96xf32> to vector<2x8x8xf32>
    %192 = tpu.concatenate %188, %189, %190, %191 in 0 : vector<2x8x8xf32>, vector<2x8x8xf32>, vector<2x8x8xf32>, vector<2x8x8xf32> -> vector<8x8x8xf32>
    "tpu.trace_start"() <{level = 10 : i32, message = "gld,gmd->glm"}> : () -> ()
    %cst_59 = arith.constant dense<0.000000e+00> : vector<8x8x8xf32>
    %193 = tpu.matmul %182, %187, %cst_59 {dimension_numbers = #tpu.dot_dimension_numbers<[2], [2], [1], [1], [0, 0, 0, 1, 1, 1], [0], [0]>} : vector<8x8x8xf32>, vector<8x8x8xf32>, vector<8x8x8xf32> -> vector<8x8x8xf32>
    %cst_60 = arith.constant 0.000000e+00 : f32
    "tpu.trace_stop"() : () -> ()
    %194 = vector.shape_cast %15 : vector<1x8x8xi1> to vector<1x8x8xi1>
    %195 = vector.broadcast %194 : vector<1x8x8xi1> to vector<8x8x8xi1>
    %196 = vector.broadcast %cst_60 : f32 to vector<8x8x8xf32>
    %197 = arith.select %195, %193, %196 : vector<8x8x8xi1>, vector<8x8x8xf32>
    "tpu.trace_start"() <{level = 10 : i32, message = "glm,gmd->gld"}> : () -> ()
    %cst_61 = arith.constant dense<0.000000e+00> : vector<8x8x8xf32>
    %198 = tpu.matmul %197, %192, %cst_61 {dimension_numbers = #tpu.dot_dimension_numbers<[2], [1], [1], [2], [0, 0, 0, 1, 1, 2], [0], [0]>} : vector<8x8x8xf32>, vector<8x8x8xf32>, vector<8x8x8xf32> -> vector<8x8x8xf32>
    "tpu.trace_stop"() : () -> ()
    %cst_62 = arith.constant 1.000000e+00 : f32
    %199 = vector.broadcast %cst_62 : f32 to vector<8x8x8xf32>
    %200 = arith.subf %199, %131 : vector<8x8x8xf32>
    %cst_63 = arith.constant 2.500000e-01 : f32
    %201 = vector.broadcast %cst_63 : f32 to vector<8x8x8xf32>
    %202 = arith.mulf %201, %200 : vector<8x8x8xf32>
    %203 = arith.mulf %127, %202 : vector<8x8x8xf32>
    %204 = arith.addf %203, %198 : vector<8x8x8xf32>
    %cst_64 = arith.constant 5.000000e-01 : f32
    %205 = vector.broadcast %cst_64 : f32 to vector<8x8x8xf32>
    %206 = arith.cmpf ogt, %204, %205 : vector<8x8x8xf32>
    %207 = arith.extui %206 : vector<8x8x8xi1> to vector<8x8x8xi32>
    %208 = arith.sitofp %207 : vector<8x8x8xi32> to vector<8x8x8xf32>
    %209 = vector.extract_strided_slice %208 {offsets = [0, 0, 0], sizes = [2, 8, 8], strides = [1, 1, 1]} : vector<8x8x8xf32> to vector<2x8x8xf32>
    %210 = vector.shape_cast %209 : vector<2x8x8xf32> to vector<16x8xf32>
    %cst_65 = arith.constant dense<0.000000e+00> : vector<16x32xf32>
    %211 = tpu.matmul %210, %2, %cst_65 {dimension_numbers = #tpu.dot_dimension_numbers<[1], [0], [0], [1], [0, 0, 1, 1], [], []>} : vector<16x8xf32>, vector<8x32xf32>, vector<16x32xf32> -> vector<16x32xf32>
    %212 = arith.addf %11, %211 : vector<16x32xf32>
    %213 = vector.extract_strided_slice %208 {offsets = [2, 0, 0], sizes = [2, 8, 8], strides = [1, 1, 1]} : vector<8x8x8xf32> to vector<2x8x8xf32>
    %214 = vector.shape_cast %213 : vector<2x8x8xf32> to vector<16x8xf32>
    %cst_66 = arith.constant dense<0.000000e+00> : vector<16x32xf32>
    %215 = tpu.matmul %214, %3, %cst_66 {dimension_numbers = #tpu.dot_dimension_numbers<[1], [0], [0], [1], [0, 0, 1, 1], [], []>} : vector<16x8xf32>, vector<8x32xf32>, vector<16x32xf32> -> vector<16x32xf32>
    %216 = arith.addf %212, %215 : vector<16x32xf32>
    %217 = vector.extract_strided_slice %208 {offsets = [4, 0, 0], sizes = [2, 8, 8], strides = [1, 1, 1]} : vector<8x8x8xf32> to vector<2x8x8xf32>
    %218 = vector.shape_cast %217 : vector<2x8x8xf32> to vector<16x8xf32>
    %cst_67 = arith.constant dense<0.000000e+00> : vector<16x32xf32>
    %219 = tpu.matmul %218, %4, %cst_67 {dimension_numbers = #tpu.dot_dimension_numbers<[1], [0], [0], [1], [0, 0, 1, 1], [], []>} : vector<16x8xf32>, vector<8x32xf32>, vector<16x32xf32> -> vector<16x32xf32>
    %220 = arith.addf %216, %219 : vector<16x32xf32>
    %221 = vector.extract_strided_slice %208 {offsets = [6, 0, 0], sizes = [2, 8, 8], strides = [1, 1, 1]} : vector<8x8x8xf32> to vector<2x8x8xf32>
    %222 = vector.shape_cast %221 : vector<2x8x8xf32> to vector<16x8xf32>
    %cst_68 = arith.constant dense<0.000000e+00> : vector<16x32xf32>
    %223 = tpu.matmul %222, %5, %cst_68 {dimension_numbers = #tpu.dot_dimension_numbers<[1], [0], [0], [1], [0, 0, 1, 1], [], []>} : vector<16x8xf32>, vector<8x32xf32>, vector<16x32xf32> -> vector<16x32xf32>
    %224 = arith.addf %220, %223 : vector<16x32xf32>
    %225 = vector.shape_cast %224 : vector<16x32xf32> to vector<2x8x32xf32>
    %c0_69 = arith.constant 0 : index
    %c2_70 = arith.constant 2 : index
    %c0_71 = arith.constant 0 : index
    %c0_72 = arith.constant 0 : index
    %226 = vector.load %arg6[%c0_69, %c2_70, %c0_71, %c0_72] : memref<2x4x8x32xf32, #tpu.memory_space<vmem>>, vector<2x1x8x32xf32>
    %227 = vector.shape_cast %226 : vector<2x1x8x32xf32> to vector<2x8x32xf32>
    %228 = vector.shape_cast %225 : vector<2x8x32xf32> to vector<2x1x8x32xf32>
    tpu.vector_store %arg6[%c0_69, %c2_70, %c0_71, %c0_72], %228 {strides = array<i32>} : memref<2x4x8x32xf32, #tpu.memory_space<vmem>>, vector<2x1x8x32xf32>,
    %c0_73 = arith.constant 0 : index
    %c3 = arith.constant 3 : index
    %c0_74 = arith.constant 0 : index
    %c0_75 = arith.constant 0 : index
    %229 = vector.load %arg1[%c0_73, %c3, %c0_74, %c0_75] : memref<2x4x8x32xf32, #tpu.memory_space<vmem>>, vector<2x1x8x32xf32>
    %230 = vector.shape_cast %229 : vector<2x1x8x32xf32> to vector<2x8x32xf32>
    %231 = vector.shape_cast %230 : vector<2x8x32xf32> to vector<16x32xf32>
    %cst_76 = arith.constant 1.000000e+00 : f32
    %232 = vector.broadcast %cst_76 : f32 to vector<16x32xf32>
    %233 = arith.subf %232, %164 : vector<16x32xf32>
    %cst_77 = arith.constant 2.500000e-01 : f32
    %234 = vector.broadcast %cst_77 : f32 to vector<16x32xf32>
    %235 = arith.mulf %234, %233 : vector<16x32xf32>
    %236 = arith.mulf %160, %235 : vector<16x32xf32>
    %237 = arith.addf %236, %231 : vector<16x32xf32>
    %cst_78 = arith.constant 5.000000e-01 : f32
    %238 = vector.broadcast %cst_78 : f32 to vector<16x32xf32>
    %239 = arith.cmpf ogt, %237, %238 : vector<16x32xf32>
    %240 = arith.extui %239 : vector<16x32xi1> to vector<16x32xi32>
    %241 = arith.sitofp %240 : vector<16x32xi32> to vector<16x32xf32>
    %cst_79 = arith.constant dense<0.000000e+00> : vector<16x96xf32>
    %242 = tpu.matmul %241, %0, %cst_79 {dimension_numbers = #tpu.dot_dimension_numbers<[1], [0], [0], [1], [0, 0, 1, 1], [], []>} : vector<16x32xf32>, vector<32x96xf32>, vector<16x96xf32> -> vector<16x96xf32>
    %243 = arith.addf %242, %8 : vector<16x96xf32>
    %cst_80 = arith.constant 1.000000e+00 : f32
    %244 = vector.broadcast %cst_80 : f32 to vector<16x96xf32>
    %245 = arith.subf %244, %176 : vector<16x96xf32>
    %cst_81 = arith.constant 2.500000e-01 : f32
    %246 = vector.broadcast %cst_81 : f32 to vector<16x96xf32>
    %247 = arith.mulf %246, %245 : vector<16x96xf32>
    %248 = arith.mulf %172, %247 : vector<16x96xf32>
    %249 = arith.addf %248, %243 : vector<16x96xf32>
    %cst_82 = arith.constant 5.000000e-01 : f32
    %250 = vector.broadcast %cst_82 : f32 to vector<16x96xf32>
    %251 = arith.cmpf ogt, %249, %250 : vector<16x96xf32>
    %252 = arith.extui %251 : vector<16x96xi1> to vector<16x96xi32>
    %253 = arith.sitofp %252 : vector<16x96xi32> to vector<16x96xf32>
    %254 = vector.shape_cast %253 : vector<16x96xf32> to vector<2x8x96xf32>
    %255 = vector.extract_strided_slice %254 {offsets = [0, 0, 0], sizes = [2, 8, 8], strides = [1, 1, 1]} : vector<2x8x96xf32> to vector<2x8x8xf32>
    %256 = vector.extract_strided_slice %254 {offsets = [0, 0, 8], sizes = [2, 8, 8], strides = [1, 1, 1]} : vector<2x8x96xf32> to vector<2x8x8xf32>
    %257 = vector.extract_strided_slice %254 {offsets = [0, 0, 16], sizes = [2, 8, 8], strides = [1, 1, 1]} : vector<2x8x96xf32> to vector<2x8x8xf32>
    %258 = vector.extract_strided_slice %254 {offsets = [0, 0, 24], sizes = [2, 8, 8], strides = [1, 1, 1]} : vector<2x8x96xf32> to vector<2x8x8xf32>
    %259 = tpu.concatenate %255, %256, %257, %258 in 0 : vector<2x8x8xf32>, vector<2x8x8xf32>, vector<2x8x8xf32>, vector<2x8x8xf32> -> vector<8x8x8xf32>
    %260 = vector.extract_strided_slice %254 {offsets = [0, 0, 32], sizes = [2, 8, 8], strides = [1, 1, 1]} : vector<2x8x96xf32> to vector<2x8x8xf32>
    %261 = vector.extract_strided_slice %254 {offsets = [0, 0, 40], sizes = [2, 8, 8], strides = [1, 1, 1]} : vector<2x8x96xf32> to vector<2x8x8xf32>
    %262 = vector.extract_strided_slice %254 {offsets = [0, 0, 48], sizes = [2, 8, 8], strides = [1, 1, 1]} : vector<2x8x96xf32> to vector<2x8x8xf32>
    %263 = vector.extract_strided_slice %254 {offsets = [0, 0, 56], sizes = [2, 8, 8], strides = [1, 1, 1]} : vector<2x8x96xf32> to vector<2x8x8xf32>
    %264 = tpu.concatenate %260, %261, %262, %263 in 0 : vector<2x8x8xf32>, vector<2x8x8xf32>, vector<2x8x8xf32>, vector<2x8x8xf32> -> vector<8x8x8xf32>
    %265 = vector.extract_strided_slice %254 {offsets = [0, 0, 64], sizes = [2, 8, 8], strides = [1, 1, 1]} : vector<2x8x96xf32> to vector<2x8x8xf32>
    %266 = vector.extract_strided_slice %254 {offsets = [0, 0, 72], sizes = [2, 8, 8], strides = [1, 1, 1]} : vector<2x8x96xf32> to vector<2x8x8xf32>
    %267 = vector.extract_strided_slice %254 {offsets = [0, 0, 80], sizes = [2, 8, 8], strides = [1, 1, 1]} : vector<2x8x96xf32> to vector<2x8x8xf32>
    %268 = vector.extract_strided_slice %254 {offsets = [0, 0, 88], sizes = [2, 8, 8], strides = [1, 1, 1]} : vector<2x8x96xf32> to vector<2x8x8xf32>
    %269 = tpu.concatenate %265, %266, %267, %268 in 0 : vector<2x8x8xf32>, vector<2x8x8xf32>, vector<2x8x8xf32>, vector<2x8x8xf32> -> vector<8x8x8xf32>
    "tpu.trace_start"() <{level = 10 : i32, message = "gld,gmd->glm"}> : () -> ()
    %cst_83 = arith.constant dense<0.000000e+00> : vector<8x8x8xf32>
    %270 = tpu.matmul %259, %264, %cst_83 {dimension_numbers = #tpu.dot_dimension_numbers<[2], [2], [1], [1], [0, 0, 0, 1, 1, 1], [0], [0]>} : vector<8x8x8xf32>, vector<8x8x8xf32>, vector<8x8x8xf32> -> vector<8x8x8xf32>
    %cst_84 = arith.constant 0.000000e+00 : f32
    "tpu.trace_stop"() : () -> ()
    %271 = vector.shape_cast %15 : vector<1x8x8xi1> to vector<1x8x8xi1>
    %272 = vector.broadcast %271 : vector<1x8x8xi1> to vector<8x8x8xi1>
    %273 = vector.broadcast %cst_84 : f32 to vector<8x8x8xf32>
    %274 = arith.select %272, %270, %273 : vector<8x8x8xi1>, vector<8x8x8xf32>
    "tpu.trace_start"() <{level = 10 : i32, message = "glm,gmd->gld"}> : () -> ()
    %cst_85 = arith.constant dense<0.000000e+00> : vector<8x8x8xf32>
    %275 = tpu.matmul %274, %269, %cst_85 {dimension_numbers = #tpu.dot_dimension_numbers<[2], [1], [1], [2], [0, 0, 0, 1, 1, 2], [0], [0]>} : vector<8x8x8xf32>, vector<8x8x8xf32>, vector<8x8x8xf32> -> vector<8x8x8xf32>
    "tpu.trace_stop"() : () -> ()
    %cst_86 = arith.constant 1.000000e+00 : f32
    %276 = vector.broadcast %cst_86 : f32 to vector<8x8x8xf32>
    %277 = arith.subf %276, %208 : vector<8x8x8xf32>
    %cst_87 = arith.constant 2.500000e-01 : f32
    %278 = vector.broadcast %cst_87 : f32 to vector<8x8x8xf32>
    %279 = arith.mulf %278, %277 : vector<8x8x8xf32>
    %280 = arith.mulf %204, %279 : vector<8x8x8xf32>
    %281 = arith.addf %280, %275 : vector<8x8x8xf32>
    %cst_88 = arith.constant 5.000000e-01 : f32
    %282 = vector.broadcast %cst_88 : f32 to vector<8x8x8xf32>
    %283 = arith.cmpf ogt, %281, %282 : vector<8x8x8xf32>
    %284 = arith.extui %283 : vector<8x8x8xi1> to vector<8x8x8xi32>
    %285 = arith.sitofp %284 : vector<8x8x8xi32> to vector<8x8x8xf32>
    %286 = vector.extract_strided_slice %285 {offsets = [0, 0, 0], sizes = [2, 8, 8], strides = [1, 1, 1]} : vector<8x8x8xf32> to vector<2x8x8xf32>
    %287 = vector.shape_cast %286 : vector<2x8x8xf32> to vector<16x8xf32>
    %cst_89 = arith.constant dense<0.000000e+00> : vector<16x32xf32>
    %288 = tpu.matmul %287, %2, %cst_89 {dimension_numbers = #tpu.dot_dimension_numbers<[1], [0], [0], [1], [0, 0, 1, 1], [], []>} : vector<16x8xf32>, vector<8x32xf32>, vector<16x32xf32> -> vector<16x32xf32>
    %289 = arith.addf %11, %288 : vector<16x32xf32>
    %290 = vector.extract_strided_slice %285 {offsets = [2, 0, 0], sizes = [2, 8, 8], strides = [1, 1, 1]} : vector<8x8x8xf32> to vector<2x8x8xf32>
    %291 = vector.shape_cast %290 : vector<2x8x8xf32> to vector<16x8xf32>
    %cst_90 = arith.constant dense<0.000000e+00> : vector<16x32xf32>
    %292 = tpu.matmul %291, %3, %cst_90 {dimension_numbers = #tpu.dot_dimension_numbers<[1], [0], [0], [1], [0, 0, 1, 1], [], []>} : vector<16x8xf32>, vector<8x32xf32>, vector<16x32xf32> -> vector<16x32xf32>
    %293 = arith.addf %289, %292 : vector<16x32xf32>
    %294 = vector.extract_strided_slice %285 {offsets = [4, 0, 0], sizes = [2, 8, 8], strides = [1, 1, 1]} : vector<8x8x8xf32> to vector<2x8x8xf32>
    %295 = vector.shape_cast %294 : vector<2x8x8xf32> to vector<16x8xf32>
    %cst_91 = arith.constant dense<0.000000e+00> : vector<16x32xf32>
    %296 = tpu.matmul %295, %4, %cst_91 {dimension_numbers = #tpu.dot_dimension_numbers<[1], [0], [0], [1], [0, 0, 1, 1], [], []>} : vector<16x8xf32>, vector<8x32xf32>, vector<16x32xf32> -> vector<16x32xf32>
    %297 = arith.addf %293, %296 : vector<16x32xf32>
    %298 = vector.extract_strided_slice %285 {offsets = [6, 0, 0], sizes = [2, 8, 8], strides = [1, 1, 1]} : vector<8x8x8xf32> to vector<2x8x8xf32>
    %299 = vector.shape_cast %298 : vector<2x8x8xf32> to vector<16x8xf32>
    %cst_92 = arith.constant dense<0.000000e+00> : vector<16x32xf32>
    %300 = tpu.matmul %299, %5, %cst_92 {dimension_numbers = #tpu.dot_dimension_numbers<[1], [0], [0], [1], [0, 0, 1, 1], [], []>} : vector<16x8xf32>, vector<8x32xf32>, vector<16x32xf32> -> vector<16x32xf32>
    %301 = arith.addf %297, %300 : vector<16x32xf32>
    %302 = vector.shape_cast %301 : vector<16x32xf32> to vector<2x8x32xf32>
    %c0_93 = arith.constant 0 : index
    %c3_94 = arith.constant 3 : index
    %c0_95 = arith.constant 0 : index
    %c0_96 = arith.constant 0 : index
    %303 = vector.load %arg6[%c0_93, %c3_94, %c0_95, %c0_96] : memref<2x4x8x32xf32, #tpu.memory_space<vmem>>, vector<2x1x8x32xf32>
    %304 = vector.shape_cast %303 : vector<2x1x8x32xf32> to vector<2x8x32xf32>
    %305 = vector.shape_cast %302 : vector<2x8x32xf32> to vector<2x1x8x32xf32>
    tpu.vector_store %arg6[%c0_93, %c3_94, %c0_95, %c0_96], %305 {strides = array<i32>} : memref<2x4x8x32xf32, #tpu.memory_space<vmem>>, vector<2x1x8x32xf32>,
    return
  }
  func.func @transform_0(%arg0: i32) -> (i32, i32, i32, i32) {
    %c0_i32 = arith.constant 0 : i32
    %c0_i32_0 = arith.constant 0 : i32
    %c0_i32_1 = arith.constant 0 : i32
    %c0_i32_2 = arith.constant 0 : i32
    return %arg0, %c0_i32, %c0_i32_0, %c0_i32_1 : i32, i32, i32, i32
  }
  func.func @transform_1(%arg0: i32) -> (i32, i32) {
    %c0_i32 = arith.constant 0 : i32
    %c0_i32_0 = arith.constant 0 : i32
    %c0_i32_1 = arith.constant 0 : i32
    return %c0_i32, %c0_i32_0 : i32, i32
  }
  func.func @transform_2(%arg0: i32) -> (i32, i32) {
    %c0_i32 = arith.constant 0 : i32
    %c0_i32_0 = arith.constant 0 : i32
    %c0_i32_1 = arith.constant 0 : i32
    return %c0_i32, %c0_i32_0 : i32, i32
  }
  func.func @transform_3(%arg0: i32) -> (i32, i32) {
    %c0_i32 = arith.constant 0 : i32
    %c0_i32_0 = arith.constant 0 : i32
    %c0_i32_1 = arith.constant 0 : i32
    return %c0_i32, %c0_i32_0 : i32, i32
  }
  func.func @transform_4(%arg0: i32) -> (i32, i32) {
    %c0_i32 = arith.constant 0 : i32
    %c0_i32_0 = arith.constant 0 : i32
    %c0_i32_1 = arith.constant 0 : i32
    return %c0_i32, %c0_i32_0 : i32, i32
  }
  func.func @transform_5(%arg0: i32) -> (i32, i32, i32, i32) {
    %c0_i32 = arith.constant 0 : i32
    %c0_i32_0 = arith.constant 0 : i32
    %c0_i32_1 = arith.constant 0 : i32
    %c0_i32_2 = arith.constant 0 : i32
    return %arg0, %c0_i32, %c0_i32_0, %c0_i32_1 : i32, i32, i32, i32
  }
}

</mosaic_0001>

<bundles_post_ra>
// kernel: tpu_custom_call.1
= control target key start
LH: loop header
LB: loop body
LE: loop exit
PB: predicated region body
PF: predicated region fallthrough
CT: control target
= control target key end

     0   :  { %10 = vsyncpa [#allocation3], 0  ;;  %s9021_s0 = inlined_call_operand.hbm [shape: f32[2,4,8,32], index: 0, kind: input, shape index: {}]   ;;  %s9022_s1 = inlined_call_operand.hbm [shape: f32[32,96], index: 1, kind: input, shape index: {}]   ;;  %s9023_s2 = inlined_call_operand.vmem [shape: f32[1,96], index: 2, kind: input, shape index: {}]   ;;  %s9024_s3 = inlined_call_operand.hbm [shape: f32[32,32], index: 3, kind: input, shape index: {}]   ;;  %s9025_s4 = inlined_call_operand.vmem [shape: f32[1,32], index: 4, kind: input, shape index: {}]   ;;  %s9026_s5 = inlined_call_operand.hbm [shape: f32[2,4,8,32], index: 5, kind: output, shape index: {}]  }
   0x1   :  { %11 = vsyncpa [#allocation6], 0 }
   0x2   :  { %12 = vsyncpa [#allocation4], 0  ;;  %s8149_s18 = smov [#allocation5]   ;;  %s8150_s20 = smov [#allocation2]  }
   0x3   :  { %s30_s19 = sshll.u32 %s8149_s18, 4  ;;  %s18_s21 = sshll.u32 %s8150_s20, 4  ;;  %s31_s19 = int_to_ptr.vmem [resolvable:$true] %s30_s19  ;;  %s19_s21 = int_to_ptr.vmem [resolvable:$true] %s18_s21 }
   0x4   :  { %s8071_s22 = scalar_lea.vmem %s31_s19, 512  ;;  %p8076_p1 = scmp.lt.s32.totalorder %s31_s19, %s31_s19 }
   0x5   :  { %p8072_p0 = scmp.ne.s32.totalorder %s31_s19, %s8071_s22  ;;  %p8077_p2 = scmp.lt.s32.totalorder %s8071_s22, %s8071_s22 }
   0x7   :  { %p8078_p3 = por %p8077_p2, %p8076_p1 }
   0x9   :  { %p8079_p4 = pnand %p8078_p3, %p8072_p0 }
   0xb   :  { %8082 = shalt.err (!%p8079_p4)
}
   0xc   :  { %s8151_s23 = smov 128   ;;  %s8152_s24 = smov 8  }
   0xd   :  { %36 = dma.hbm_to_vmem [thread:$0]  %s9022_s1, 512, %s31_s19, [#allocation6], %s8151_s23, %s8151_s23, %s8152_s24  }
   0xe   :  { %s8091_s27 = scalar_lea.vmem %s19_s21, 1024  ;;  %p8096_p6 = scmp.lt.s32.totalorder %s19_s21, %s19_s21 }
   0xf   :  { %p8092_p5 = scmp.ne.s32.totalorder %s19_s21, %s8091_s27  ;;  %p8097_p7 = scmp.lt.s32.totalorder %s8091_s27, %s8091_s27 }
  0x11   :  { %p8098_p8 = por %p8097_p7, %p8096_p6 }
  0x13   :  { %p8099_p9 = pnand %p8098_p8, %p8092_p5 }
  0x15   :  { %8102 = shalt.err (!%p8099_p9)
}
  0x16   :  { %24 = dma.hbm_to_vmem [thread:$0]  %s9021_s0, 1024, %s19_s21, [#allocation3], %s8151_s23, %s8151_s23, %s8152_s24  }
  0x17   :  { %s8153_s30 = smov [#allocation7]  }
  0x18   :  { %s44_s6 = sshll.u32 %s8153_s30, 4  ;;  %s45_s6 = int_to_ptr.vmem [resolvable:$true] %s44_s6 }
  0x19   :  { %s8111_s7 = scalar_lea.vmem %s45_s6, 512  ;;  %p8116_p11 = scmp.lt.s32.totalorder %s45_s6, %s45_s6 }
  0x1a   :  { %p8112_p10 = scmp.ne.s32.totalorder %s45_s6, %s8111_s7  ;;  %p8117_p12 = scmp.lt.s32.totalorder %s8111_s7, %s8111_s7 }
  0x1c   :  { %p8118_p13 = por %p8117_p12, %p8116_p11 }
  0x1e   :  { %p8119_p0 = pnand %p8118_p13, %p8112_p10 }
  0x20   :  { %8122 = shalt.err (!%p8119_p0)
}
  0x21   :  { %50 = dma.hbm_to_vmem [thread:$0]  %s9024_s3, 512, %s45_s6, [#allocation6], %s8151_s23, %s8151_s23, %s8152_s24  }
  0x22   :  { %8143 = dma.done.wait [#allocation3], 1024  }
  0x23   :  { %8144 = vsyncadd [#allocation3], 4294966272 }
  0x24   :  { %8145 = dma.done.wait [#allocation6], 1024  }
  0x25   :  { %8146 = vsyncadd [#allocation6], 4294966272  ;;  %v8154_v0 = vmov 0.0   ;;  %v8211_v1 = vld [vmem:[#allocation5 + $0x18] sm:$0xff]  ;;  %v8213_v2 = vld [vmem:[#allocation5 + $0x10] sm:$0xff]  ;;  %vm97_vm0 = vcmask 261120   ;;  %v84_v44 = vlaneseq }
  0x26   :  { %7422 = vmatprep.subr.mxu1 %v8154_v0  ;;  %7411 = vmatprep.subr.mxu0 %v8211_v1  ;;  %v89_v3 = vld [vmem:[#allocation2] sm:$0xff]  ;;  %v8217_v4 = vld [vmem:[#allocation5 + $0x8] sm:$0xff]  ;;  %vm8155_vm3 = vmmov 0   ;;  %s8156_s9 = smov 96   ;;  %s8157_s10 = smov 120   ;;  %vm201_vm6 = vcmask 64512  }
  0x27   :  { %7412 = vmatpush3.msra.mxu0 %v8211_v1  ;;  %vm91_vm1 = vcmp.gt.f32.partialorder %v89_v3, 0.5  ;;  %v90_v5 = vld [vmem:[#allocation2 + $0x20] sm:$0xff]  ;;  %7424 = vmatprep.mubr.msk.f32.mxu1 %vm8155_vm3, %v8154_v0  ;;  %s8158_s11 = smov 112   ;;  %s8159_s12 = smov 104   ;;  %v85_v49 = vshrl.u32 %v84_v44, 7  ;;  %v87_v50 = vand.u32 127, %v84_v44 }
  0x28   :  { %7413 = vmatprep.subr.mxu0 %v8213_v2  ;;  %v7027_v6 = vsel %vm91_vm1, 1.0, %v8154_v0  ;;  %vm92_vm2 = vcmp.gt.f32.partialorder %v90_v5, 0.5  ;;  %v8222_v7 = vld [vmem:[#allocation5] sm:$0xff]  ;;  %s8160_s13 = smov 64  }
  0x29   :  { %7414 = vmatpush3.msra.mxu0 %v8213_v2  ;;  %7419 = vmatprep.mubr.msk.f32.mxu0 %vm97_vm0, %v7027_v6  ;;  %v1787_v8 = vsub.f32 1.0, %v7027_v6  ;;  %v7028_v9 = vsel %vm92_vm2, 1.0, %v8154_v0  ;;  %v8243_v15 = vld [vmem:[%s9023_s2] ss:$0 sm:$0xff]  ;;  %vm8312_vm7 = vcmp.ge.s32.totalorder %v85_v49, %v87_v50 }
  0x2a   :  { %7415 = vmatprep.subr.mxu0 %v8217_v4  ;;  %v1788_v10 = vsub.f32 1.0, %v7028_v9 }
  0x2b   :  { %7416 = vmatpush3.msra.mxu0 %v8217_v4  ;;  %v1789_v11 = vmul.f32 0.25, %v1787_v8 }
  0x2c   :  { %7417 = vmatprep.subr.mxu0 %v8222_v7  ;;  %v1790_v12 = vmul.f32 0.25, %v1788_v10 }
  0x2d   :  { %7418 = vmatpush3.msra.mxu0 %v8222_v7  ;;  %v8230_v13 = vmul.f32 %v1789_v11, %v89_v3 }
  0x2e   :  { %7420 = vmatmul.mubr.msk.f32.vlgmr.msra.gmra.mxu0 %vm97_vm0, %v7028_v9  ;;  %v8233_v14 = vmul.f32 %v1790_v12, %v90_v5  ;;  %7432 = vmatprep.subr.mxu0 %v8154_v0 }
  0x2f   :  { %7434 = vmatprep.mubr.msk.f32.mxu0 %vm8155_vm3, %v8154_v0 }
  0xee   :  { %v7421_v16 = vpop.f32.mrf.mxu0 }
  0xef   :  { %v8246_v17 = vadd.f32 %v7421_v16, %v8243_v15 }
  0xf0   :  { %v170_v18 = vpop.f32.mrf.mxu0 }
  0xf1   :  { %vm180_vm4 = vcmp.gt.f32.partialorder %v8246_v17, 0.5  ;;  %v8250_v19 = vadd.f32 %v8243_v15, %v170_v18 }
  0xf2   :  { %v8254_v20 = vsel %vm180_vm4, 1.0, %v8154_v0 }
  0xf3   :  { %vm179_vm5 = vcmp.gt.f32.partialorder %v8250_v19, 0.5 }
  0xf4   :  { %v8257_v21 = vsel %vm179_vm5, 1.0, %v8154_v0 }
  0xf5   :  { %199 = vrot.lane.b32.xlu1 %v8257_v21, %s8156_s9  ;;  %v7868_v22 = vpack.i.bf16 %v8254_v20, %v8257_v21 }
  0xf7   :  { %7869 = vrot.lane.b32.xlu0 %v7868_v22, %s8157_s10 }
  0xf9   :  { %276 = vrot.lane.b32.xlu1 %v8254_v20, %s8156_s9 }
  0xfb   :  { %7874 = vrot.lane.b32.xlu0 %v7868_v22, %s8158_s11 }
 0x167   :  { %v200_v23 = vpop.permute.xlu1 %199 }
 0x168   :  { %7423 = vmatpush3.xpose.msk.msra.mxu1 %vm201_vm6, %v200_v23 }
 0x169   :  { %v7870_v24 = vpop.permute.xlu0 %7869  ;;  %7427 = vmatprep.subr.mxu1 %v8154_v0 }
 0x16a   :  { %v7872_v25 = vunpack.i.h.bf16 %v7870_v24  ;;  %v7871_v26 = vunpack.i.l.bf16 %v7870_v24  ;;  %7879 = vrot.lane.b32.xlu0 %v7870_v24, %s8156_s9 }
 0x16b   :  { %7425 = vmatmul.mubr.msk.f32.vlgmr.msra.gmra.mxu1 %vm201_vm6, %v8257_v21  ;;  %v277_v27 = vpop.permute.xlu1 %276 }
 0x16c   :  { %7428 = vmatpush3.xpose.msk.msra.mxu1 %vm201_vm6, %v277_v27  ;;  %7429 = vmatprep.mubr.msk.f32.mxu1 %vm8155_vm3, %v8154_v0 }
 0x16d   :  { %v7875_v28 = vpop.permute.xlu0 %7874  ;;  %7437 = vmatprep.subr.mxu1 %v8154_v0 }
 0x16e   :  { %v7877_v29 = vunpack.i.h.bf16 %v7875_v28  ;;  %v7876_v30 = vunpack.i.l.bf16 %v7875_v28  ;;  %7884 = vrot.lane.b32.xlu1 %v7875_v28, %s8156_s9  ;;  %7889 = vrot.lane.b32.xlu0 %v7868_v22, %s8159_s12 }
 0x16f   :  { %7430 = vmatmul.mubr.msk.f32.vlgmr.msra.gmra.mxu1 %vm201_vm6, %v8254_v20 }
 0x170   :  { %7439 = vmatprep.mubr.msk.f32.mxu1 %vm8155_vm3, %v8154_v0 }
 0x172   :  { %7899 = vrot.lane.b32.xlu0 %v7868_v22, %s8160_s13  ;;  %v8353_v22 = vld [vmem:[#allocation7] sm:$0xff] }
 0x176   :  { %7909 = vrot.lane.b32.xlu0 %v7875_v28, %s8160_s13 }
 0x1dc   :  { %v7880_v31 = vpop.permute.xlu0 %7879 }
 0x1dd   :  { %v7882_v32 = vunpack.i.h.bf16 %v7880_v31  ;;  %v7881_v33 = vunpack.i.l.bf16 %v7880_v31 }
 0x1df   :  { %7433 = vmatpush3.xpose.msk.msra.mxu0 %vm201_vm6, %v7881_v33  ;;  %7438 = vmatpush3.xpose.msk.msra.mxu1 %vm201_vm6, %v7882_v32 }
 0x1e0   :  { %v7885_v34 = vpop.permute.xlu1 %7884  ;;  %v7890_v35 = vpop.permute.xlu0 %7889  ;;  %7442 = vmatprep.subr.mxu0 %v8154_v0  ;;  %7447 = vmatprep.subr.mxu1 %v8154_v0 }
 0x1e1   :  { %v7887_v36 = vunpack.i.h.bf16 %v7885_v34  ;;  %v7886_v37 = vunpack.i.l.bf16 %v7885_v34  ;;  %v7892_v38 = vunpack.i.h.bf16 %v7890_v35  ;;  %v7891_v39 = vunpack.i.l.bf16 %v7890_v35  ;;  %7894 = vrot.lane.b32.xlu1 %v7890_v35, %s8156_s9 }
 0x1e2   :  { %7435 = vmatmul.mubr.msk.f32.vlgmr.msra.gmra.mxu0 %vm201_vm6, %v7871_v26  ;;  %7440 = vmatmul.mubr.msk.f32.vlgmr.msra.gmra.mxu1 %vm201_vm6, %v7872_v25  ;;  %v8361_v25 = vld [vmem:[#allocation7 + $0x8] sm:$0xff] }
 0x1e3   :  { %1350 = vrot.lane.b32.xlu0 %v7892_v38, %s8160_s13  ;;  %7443 = vmatpush3.xpose.msk.msra.mxu0 %vm201_vm6, %v7886_v37 }
 0x1e4   :  { %7448 = vmatpush3.xpose.msk.msra.mxu1 %vm201_vm6, %v7887_v36  ;;  %7444 = vmatprep.mubr.msk.f32.mxu0 %vm8155_vm3, %v8154_v0  ;;  %v7900_v48 = vpop.permute.xlu0 %7899 }
 0x1e5   :  { %7449 = vmatprep.mubr.msk.f32.mxu1 %vm8155_vm3, %v8154_v0  ;;  %7452 = vmatprep.subr.mxu0 %v8154_v0  ;;  %v7902_v51 = vunpack.i.h.bf16 %v7900_v48  ;;  %v7901_v52 = vunpack.i.l.bf16 %v7900_v48 }
 0x1e6   :  { %7445 = vmatmul.mubr.msk.f32.vlgmr.msra.gmra.mxu0 %vm201_vm6, %v7876_v30  ;;  %7457 = vmatprep.subr.mxu1 %v8154_v0  ;;  %v8368_v30 = vld [vmem:[#allocation7 + $0x10] sm:$0xff] }
 0x1e7   :  { %7450 = vmatmul.mubr.msk.f32.vlgmr.msra.gmra.mxu1 %vm201_vm6, %v7877_v29  ;;  %7454 = vmatprep.mubr.msk.f32.mxu0 %vm8155_vm3, %v8154_v0 }
 0x1e8   :  { %7459 = vmatprep.mubr.msk.f32.mxu1 %vm8155_vm3, %v8154_v0  ;;  %7904 = vrot.lane.b32.xlu1 %v7870_v24, %s8160_s13  ;;  %v7910_v59 = vpop.permute.xlu0 %7909 }
 0x1e9   :  { %v7912_v62 = vunpack.i.h.bf16 %v7910_v59  ;;  %v7911_v63 = vunpack.i.l.bf16 %v7910_v59 }
 0x1ec   :  { %1274 = vrot.lane.b32.xlu1 %v7891_v39, %s8160_s13 }
 0x22b   :  { %v272_v40 = vpop.f32.mrf.mxu1 }
 0x22c   :  { %v810_v55 = vsel %vm8312_vm7, %v272_v40, 0.0 }
 0x22d   :  { %v7426_v41 = vpop.f32.mrf.mxu1 }
 0x22f   :  { %v348_v42 = vpop.f32.mrf.mxu1 }
 0x230   :  { %v811_v56 = vsel %vm8312_vm7, %v348_v42, 0.0 }
 0x231   :  { %v7431_v43 = vpop.f32.mrf.mxu1 }
 0x253   :  { %v7895_v45 = vpop.permute.xlu1 %7894 }
 0x254   :  { %v7897_v46 = vunpack.i.h.bf16 %v7895_v45  ;;  %v7896_v47 = vunpack.i.l.bf16 %v7895_v45  ;;  %v1785_v45 = vld [vmem:[#allocation2 + $0x8] sm:$0xff] }
 0x255   :  { %v1351_v23 = vpop.permute.xlu0 %1350 }
 0x256   :  { %7453 = vmatpush3.xpose.msk.msra.mxu0 %vm201_vm6, %v7896_v47  ;;  %7458 = vmatpush3.xpose.msk.msra.mxu1 %vm201_vm6, %v7897_v46  ;;  %v8385_v46 = vld [vmem:[#allocation7 + $0x18] sm:$0xff]  ;;  %v8388_v47 = vadd.f32 %v8230_v13, %v1785_v45 }
 0x257   :  { %7462 = vmatprep.subr.mxu0 %v8154_v0  ;;  %7467 = vmatprep.subr.mxu1 %v8154_v0 }
 0x258   :  { %vm1795_vm12 = vcmp.gt.f32.partialorder %v8388_v47, 0.5 }
 0x259   :  { %7455 = vmatmul.mubr.msk.f32.vlgmr.msra.gmra.mxu0 %vm201_vm6, %v7891_v39  ;;  %7460 = vmatmul.mubr.msk.f32.vlgmr.msra.gmra.mxu1 %vm201_vm6, %v7892_v38 }
 0x25a   :  { %v7905_v54 = vpop.permute.xlu1 %7904  ;;  %7463 = vmatpush3.msra.mxu0 %v7901_v52  ;;  %7468 = vmatpush3.msra.mxu1 %v7902_v51 }
 0x25b   :  { %7464 = vmatprep.mubr.msk.f32.mxu0 %vm8155_vm3, %v8154_v0  ;;  %7469 = vmatprep.mubr.msk.f32.mxu1 %vm8155_vm3, %v8154_v0  ;;  %v7907_v57 = vunpack.i.h.bf16 %v7905_v54  ;;  %v7906_v58 = vunpack.i.l.bf16 %v7905_v54 }
 0x25c   :  { %7472 = vmatprep.subr.mxu0 %v8154_v0  ;;  %7477 = vmatprep.subr.mxu1 %v8154_v0 }
 0x25d   :  { %7465 = vmatmul.mubr.msk.f32.vlgmr.msra.gmra.mxu0 %vm201_vm6, %v810_v55  ;;  %7470 = vmatmul.mubr.msk.f32.vlgmr.msra.gmra.mxu1 %vm201_vm6, %v811_v56  ;;  %v1786_v55 = vld [vmem:[#allocation2 + $0x28] sm:$0xff] }
 0x25e   :  { %7473 = vmatpush3.msra.mxu0 %v7906_v58  ;;  %7478 = vmatpush3.msra.mxu1 %v7907_v57  ;;  %v1275_v12 = vpop.permute.xlu1 %1274 }
 0x25f   :  { %7474 = vmatprep.mubr.msk.f32.mxu0 %vm8155_vm3, %v8154_v0  ;;  %7479 = vmatprep.mubr.msk.f32.mxu1 %vm8155_vm3, %v8154_v0 }
 0x260   :  { %7482 = vmatprep.subr.mxu0 %v8154_v0  ;;  %7487 = vmatprep.subr.mxu1 %v8154_v0 }
 0x2a2   :  { %v424_v60 = vpop.f32.mrf.mxu0  ;;  %v500_v61 = vpop.f32.mrf.mxu1 }
 0x2a3   :  { %v812_v3 = vsel %vm8312_vm7, %v424_v60, 0.0  ;;  %v813_v5 = vsel %vm8312_vm7, %v500_v61, 0.0  ;;  %v8398_v61 = vadd.f32 %v8233_v14, %v1786_v55 }
 0x2a4   :  { %v7436_v6 = vpop.f32.mrf.mxu0  ;;  %v7441_v8 = vpop.f32.mrf.mxu1  ;;  %7475 = vmatmul.mubr.msk.f32.vlgmr.msra.gmra.mxu0 %vm201_vm6, %v812_v3  ;;  %7480 = vmatmul.mubr.msk.f32.vlgmr.msra.gmra.mxu1 %vm201_vm6, %v813_v5  ;;  %v8402_v3 = vsel %vm1795_vm12, 1.0, %v8154_v0 }
 0x2a5   :  { %7483 = vmatpush3.msra.mxu0 %v7911_v63  ;;  %7488 = vmatpush3.msra.mxu1 %v7912_v62  ;;  %vm1796_vm15 = vcmp.gt.f32.partialorder %v8398_v61, 0.5 }
 0x2a6   :  { %v576_v9 = vpop.f32.mrf.mxu0  ;;  %7484 = vmatprep.mubr.msk.f32.mxu0 %vm8155_vm3, %v8154_v0  ;;  %7489 = vmatprep.mubr.msk.f32.mxu1 %vm8155_vm3, %v8154_v0 }
 0x2a7   :  { %v814_v10 = vsel %vm8312_vm7, %v576_v9, 0.0  ;;  %v652_v11 = vpop.f32.mrf.mxu1  ;;  %7492 = vmatprep.subr.mxu0 %v8154_v0  ;;  %7497 = vmatprep.subr.mxu1 %v8154_v0 }
 0x2a8   :  { %v815_v16 = vsel %vm8312_vm7, %v652_v11, 0.0  ;;  %v7446_v18 = vpop.f32.mrf.mxu0  ;;  %7485 = vmatmul.mubr.msk.f32.vlgmr.msra.gmra.mxu0 %vm201_vm6, %v814_v10 }
 0x2a9   :  { %v7451_v24 = vpop.f32.mrf.mxu1  ;;  %7490 = vmatmul.mubr.msk.f32.vlgmr.msra.gmra.mxu1 %vm201_vm6, %v815_v16  ;;  %7493 = vmatpush3.msra.mxu0 %v1275_v12 }
 0x2aa   :  { %7498 = vmatpush3.msra.mxu1 %v1351_v23  ;;  %7494 = vmatprep.mubr.msk.f32.mxu0 %vm8155_vm3, %v8154_v0  ;;  %v8425_v23 = vsel %vm1796_vm15, 1.0, %v8154_v0 }
 0x2ab   :  { %7499 = vmatprep.mubr.msk.f32.mxu1 %vm8155_vm3, %v8154_v0  ;;  %7502 = vmatprep.subr.mxu0 %v8353_v22 }
 0x2ac   :  { %7507 = vmatprep.subr.mxu1 %v8361_v25 }
 0x319   :  { %v728_v26 = vpop.f32.mrf.mxu0  ;;  %v804_v27 = vpop.f32.mrf.mxu1 }
 0x31a   :  { %v816_v28 = vsel %vm8312_vm7, %v728_v26, 0.0  ;;  %v817_v29 = vsel %vm8312_vm7, %v804_v27, 0.0 }
 0x31b   :  { %v7456_v31 = vpop.f32.mrf.mxu0  ;;  %v7461_v32 = vpop.f32.mrf.mxu1  ;;  %7495 = vmatmul.mubr.msk.f32.vlgmr.msra.gmra.mxu0 %vm201_vm6, %v816_v28  ;;  %7500 = vmatmul.mubr.msk.f32.vlgmr.msra.gmra.mxu1 %vm201_vm6, %v817_v29 }
 0x31c   :  { %7503 = vmatpush3.msra.mxu0 %v8353_v22  ;;  %7508 = vmatpush3.msra.mxu1 %v8361_v25 }
 0x31d   :  { %v890_v33 = vpop.f32.mrf.mxu0  ;;  %v966_v34 = vpop.f32.mrf.mxu1  ;;  %7512 = vmatprep.subr.mxu0 %v8368_v30  ;;  %7517 = vmatprep.subr.mxu1 %v8385_v46 }
 0x31e   :  { %vm1426_vm8 = vcmp.gt.f32.partialorder %v890_v33, 0.5  ;;  %vm1427_vm9 = vcmp.gt.f32.partialorder %v966_v34, 0.5 }
 0x31f   :  { %v7057_v35 = vsel %vm1426_vm8, 1.0, %v8154_v0  ;;  %v7058_v36 = vsel %vm1427_vm9, 1.0, %v8154_v0  ;;  %v7466_v37 = vpop.f32.mrf.mxu0  ;;  %v7471_v38 = vpop.f32.mrf.mxu1 }
 0x320   :  { %v3134_v39 = vsub.f32 1.0, %v7057_v35  ;;  %v3135_v40 = vsub.f32 1.0, %v7058_v36  ;;  %7504 = vmatprep.mubr.msk.f32.mxu0 %vm201_vm6, %v7057_v35  ;;  %v8447_v35 = vld [vmem:[%s9025_s4] ss:$0 sm:$0xff] }
 0x321   :  { %7505 = vmatmul.mubr.msk.f32.vlgmr.msra.gmra.mxu0 %vm201_vm6, %v7058_v36 }
 0x322   :  { %v3142_v41 = vmul.f32 0.25, %v3134_v39  ;;  %v3143_v42 = vmul.f32 0.25, %v3135_v40  ;;  %7513 = vmatpush3.msra.mxu0 %v8368_v30 }
 0x323   :  { %7522 = vmatprep.subr.mxu0 %v8211_v1 }
 0x324   :  { %v8381_v43 = vmul.f32 %v3142_v41, %v890_v33  ;;  %v8383_v44 = vmul.f32 %v3143_v42, %v966_v34  ;;  %v1883_v42 = vsub.f32 1.0, %v8254_v20 }
 0x364   :  { %v1042_v48 = vpop.f32.mrf.mxu0  ;;  %v1118_v49 = vpop.f32.mrf.mxu1 }
 0x365   :  { %vm1428_vm10 = vcmp.gt.f32.partialorder %v1042_v48, 0.5  ;;  %vm1429_vm11 = vcmp.gt.f32.partialorder %v1118_v49, 0.5 }
 0x366   :  { %v7059_v50 = vsel %vm1428_vm10, 1.0, %v8154_v0  ;;  %v7060_v51 = vsel %vm1429_vm11, 1.0, %v8154_v0  ;;  %v7476_v52 = vpop.f32.mrf.mxu0  ;;  %v7481_v54 = vpop.f32.mrf.mxu1 }
 0x367   :  { %v3136_v56 = vsub.f32 1.0, %v7059_v50  ;;  %v3137_v57 = vsub.f32 1.0, %v7060_v51  ;;  %7509 = vmatprep.mubr.msk.f32.mxu1 %vm201_vm6, %v7059_v50 }
 0x368   :  { %v1194_v13 = vpop.f32.mrf.mxu0  ;;  %7510 = vmatmul.mubr.msk.f32.vlgmr.msra.gmra.mxu1 %vm201_vm6, %v7060_v51 }
 0x369   :  { %v3144_v58 = vmul.f32 0.25, %v3136_v56  ;;  %v3145_v59 = vmul.f32 0.25, %v3137_v57  ;;  %vm1430_vm13 = vcmp.gt.f32.partialorder %v1194_v13, 0.5  ;;  %v1270_v60 = vpop.f32.mrf.mxu1  ;;  %7518 = vmatpush3.msra.mxu1 %v8385_v46 }
 0x36a   :  { %v7061_v62 = vsel %vm1430_vm13, 1.0, %v8154_v0  ;;  %vm1431_vm14 = vcmp.gt.f32.partialorder %v1270_v60, 0.5  ;;  %v7486_v63 = vpop.f32.mrf.mxu0  ;;  %7533 = vmatprep.subr.mxu1 %v8154_v0 }
 0x36b   :  { %v8405_v5 = vmul.f32 %v3144_v58, %v1042_v48  ;;  %v8407_v6 = vmul.f32 %v3145_v59, %v1118_v49  ;;  %v3138_v8 = vsub.f32 1.0, %v7061_v62  ;;  %v7062_v9 = vsel %vm1431_vm14, 1.0, %v8154_v0  ;;  %v7491_v10 = vpop.f32.mrf.mxu1  ;;  %7514 = vmatprep.mubr.msk.f32.mxu0 %vm201_vm6, %v7061_v62 }
 0x36c   :  { %v3139_v14 = vsub.f32 1.0, %v7062_v9  ;;  %7515 = vmatmul.mubr.msk.f32.vlgmr.msra.gmra.mxu0 %vm201_vm6, %v7062_v9  ;;  %v1882_v48 = vsub.f32 1.0, %v8257_v21  ;;  %v1885_v49 = vmul.f32 0.25, %v1883_v42 }
 0x36d   :  { %v3146_v11 = vmul.f32 0.25, %v3138_v8  ;;  %7523 = vmatpush3.msra.mxu0 %v8211_v1  ;;  %7530 = vmatprep.mubr.msk.f32.mxu0 %vm97_vm0, %v8402_v3 }
 0x36e   :  { %v3147_v12 = vmul.f32 0.25, %v3139_v14  ;;  %7524 = vmatprep.subr.mxu0 %v8213_v2  ;;  %v1884_v51 = vmul.f32 0.25, %v1882_v48  ;;  %v1887_v54 = vmul.f32 %v1885_v49, %v8246_v17 }
 0x36f   :  { %v8417_v16 = vmul.f32 %v3146_v11, %v1194_v13  ;;  %7525 = vmatpush3.msra.mxu0 %v8213_v2 }
 0x370   :  { %v8420_v18 = vmul.f32 %v3147_v12, %v1270_v60  ;;  %7526 = vmatprep.subr.mxu0 %v8217_v4  ;;  %v1886_v57 = vmul.f32 %v1884_v51, %v8250_v19 }
 0x371   :  { %7527 = vmatpush3.msra.mxu0 %v8217_v4 }
 0x372   :  { %7528 = vmatprep.subr.mxu0 %v8222_v7 }
 0x373   :  { %7529 = vmatpush3.msra.mxu0 %v8222_v7 }
 0x374   :  { %7531 = vmatmul.mubr.msk.f32.vlgmr.msra.gmra.mxu0 %vm97_vm0, %v8425_v23  ;;  %7543 = vmatprep.subr.mxu0 %v8154_v0 }
 0x375   :  { %7545 = vmatprep.mubr.msk.f32.mxu0 %vm8155_vm3, %v8154_v0 }
 0x3db   :  { %v1346_v2 = vpop.f32.mrf.mxu0  ;;  %v1422_v24 = vpop.f32.mrf.mxu1 }
 0x3dc   :  { %vm1432_vm1 = vcmp.gt.f32.partialorder %v1346_v2, 0.5  ;;  %vm1433_vm2 = vcmp.gt.f32.partialorder %v1422_v24, 0.5 }
 0x3dd   :  { %v7063_v4 = vsel %vm1432_vm1, 1.0, %v8154_v0  ;;  %v7064_v26 = vsel %vm1433_vm2, 1.0, %v8154_v0  ;;  %v7496_v27 = vpop.f32.mrf.mxu0  ;;  %v7501_v28 = vpop.f32.mrf.mxu1 }
 0x3de   :  { %v3140_v29 = vsub.f32 1.0, %v7063_v4  ;;  %v3141_v7 = vsub.f32 1.0, %v7064_v26  ;;  %7519 = vmatprep.mubr.msk.f32.mxu1 %vm201_vm6, %v7063_v4 }
 0x3df   :  { %7520 = vmatmul.mubr.msk.f32.vlgmr.msra.gmra.mxu1 %vm201_vm6, %v7064_v26 }
 0x3e0   :  { %v3148_v31 = vmul.f32 0.25, %v3140_v29  ;;  %v3149_v32 = vmul.f32 0.25, %v3141_v7  ;;  %7535 = vmatprep.mubr.msk.f32.mxu1 %vm8155_vm3, %v8154_v0 }
 0x3e1   :  { %v7506_v36 = vpop.f32.mrf.mxu0 }
 0x3e2   :  { %v8440_v33 = vmul.f32 %v3148_v31, %v1346_v2  ;;  %v8442_v34 = vmul.f32 %v3149_v32, %v1422_v24  ;;  %v1532_v38 = vadd.f32 %v7506_v36, %v8447_v35 }
 0x3e3   :  { %v1522_v39 = vpop.f32.mrf.mxu0 }
 0x3e4   :  { %v1531_v19 = vadd.f32 %v8447_v35, %v1522_v39 }
 0x428   :  { %v7511_v37 = vpop.f32.mrf.mxu1 }
 0x429   :  { %v1615_v40 = vadd.f32 %v7511_v37, %v1532_v38 }
 0x42c   :  { %v7516_v41 = vpop.f32.mrf.mxu0 }
 0x42d   :  { %v1698_v45 = vadd.f32 %v7516_v41, %v1615_v40 }
 0x42e   :  { %v1688_v50 = vpop.f32.mrf.mxu0 }
 0x434   :  { %v7532_v52 = vpop.f32.mrf.mxu0 }
 0x435   :  { %v1879_v55 = vadd.f32 %v7532_v52, %v8243_v15 }
 0x436   :  { %v1873_v56 = vpop.f32.mrf.mxu0 }
 0x437   :  { %v8455_v13 = vadd.f32 %v1887_v54, %v1879_v55  ;;  %v1874_v58 = vadd.f32 %v8243_v15, %v1873_v56  ;;  %v1605_v15 = vpop.f32.mrf.mxu1 }
 0x438   :  { %v1614_v60 = vadd.f32 %v1605_v15, %v1531_v19 }
 0x439   :  { %vm1891_vm4 = vcmp.gt.f32.partialorder %v8455_v13, 0.5  ;;  %v8459_v20 = vadd.f32 %v1886_v57, %v1874_v58 }
 0x43a   :  { %v8463_v21 = vsel %vm1891_vm4, 1.0, %v8154_v0  ;;  %v1697_v63 = vadd.f32 %v1688_v50, %v1614_v60 }
 0x43b   :  { %vm1890_vm5 = vcmp.gt.f32.partialorder %v8459_v20, 0.5 }
 0x43c   :  { %v8466_v17 = vsel %vm1890_vm5, 1.0, %v8154_v0 }
 0x43d   :  { %v7918_v59 = vpack.i.bf16 %v8463_v21, %v8466_v17 }
 0x43f   :  { %7919 = vrot.lane.b32.xlu0 %v7918_v59, %s8158_s11  ;;  %7914 = vrot.lane.b32.xlu1 %v7918_v59, %s8157_s10 }
 0x443   :  { %1986 = vrot.lane.b32.xlu0 %v8463_v21, %s8156_s9  ;;  %1910 = vrot.lane.b32.xlu1 %v8466_v17, %s8156_s9 }
 0x49f   :  { %v7521_v62 = vpop.f32.mrf.mxu1 }
 0x4a0   :  { %v1781_v8 = vadd.f32 %v7521_v62, %v1698_v45 }
 0x4a1   :  { %v1771_v9 = vpop.f32.mrf.mxu1 }
 0x4a2   :  { %1783 = vst.msk [vmem:[#allocation8 + $0x20] sm:$0xff] %vm97_vm0, %v1781_v8  ;;  %v1780_v10 = vadd.f32 %v1771_v9, %v1697_v63 }
 0x4a4   :  { %1782 = vst.msk [vmem:[#allocation8] sm:$0xff] %vm97_vm0, %v1780_v10 }
 0x4b1   :  { %v7920_v14 = vpop.permute.xlu0 %7919  ;;  %v7915_v11 = vpop.permute.xlu1 %7914 }
 0x4b2   :  { %v7922_v12 = vunpack.i.h.bf16 %v7920_v14  ;;  %v7921_v2 = vunpack.i.l.bf16 %v7920_v14  ;;  %v7917_v24 = vunpack.i.h.bf16 %v7915_v11  ;;  %v7916_v4 = vunpack.i.l.bf16 %v7915_v11  ;;  %7929 = vrot.lane.b32.xlu0 %v7920_v14, %s8156_s9  ;;  %7924 = vrot.lane.b32.xlu1 %v7915_v11, %s8156_s9 }
 0x4b5   :  { %v1911_v26 = vpop.permute.xlu1 %1910  ;;  %v1987_v27 = vpop.permute.xlu0 %1986 }
 0x4b6   :  { %7534 = vmatpush3.xpose.msk.msra.mxu1 %vm201_vm6, %v1911_v26  ;;  %7934 = vrot.lane.b32.xlu1 %v7918_v59, %s8159_s12 }
 0x4b7   :  { %7538 = vmatprep.subr.mxu1 %v8154_v0 }
 0x4b9   :  { %7536 = vmatmul.mubr.msk.f32.vlgmr.msra.gmra.mxu1 %vm201_vm6, %v8466_v17 }
 0x4ba   :  { %7539 = vmatpush3.xpose.msk.msra.mxu1 %vm201_vm6, %v1987_v27  ;;  %7540 = vmatprep.mubr.msk.f32.mxu1 %vm8155_vm3, %v8154_v0 }
 0x4bb   :  { %7548 = vmatprep.subr.mxu1 %v8154_v0  ;;  %7944 = vrot.lane.b32.xlu1 %v7918_v59, %s8160_s13 }
 0x4bd   :  { %7541 = vmatmul.mubr.msk.f32.vlgmr.msra.gmra.mxu1 %vm201_vm6, %v8463_v21 }
 0x4be   :  { %7550 = vmatprep.mubr.msk.f32.mxu1 %vm8155_vm3, %v8154_v0 }
 0x4bf   :  { %7954 = vrot.lane.b32.xlu1 %v7920_v14, %s8160_s13 }
 0x524   :  { %v7925_v28 = vpop.permute.xlu1 %7924  ;;  %v7930_v31 = vpop.permute.xlu0 %7929 }
 0x525   :  { %v7927_v29 = vunpack.i.h.bf16 %v7925_v28  ;;  %v7926_v7 = vunpack.i.l.bf16 %v7925_v28  ;;  %v7931_v36 = vunpack.i.l.bf16 %v7930_v31  ;;  %v7932_v39 = vunpack.i.h.bf16 %v7930_v31 }
 0x527   :  { %7544 = vmatpush3.xpose.msk.msra.mxu0 %vm201_vm6, %v7926_v7  ;;  %7549 = vmatpush3.xpose.msk.msra.mxu1 %vm201_vm6, %v7927_v29 }
 0x528   :  { %v7935_v32 = vpop.permute.xlu1 %7934  ;;  %7553 = vmatprep.subr.mxu0 %v8154_v0  ;;  %7558 = vmatprep.subr.mxu1 %v8154_v0 }
 0x529   :  { %v7937_v37 = vunpack.i.h.bf16 %v7935_v32  ;;  %v7936_v38 = vunpack.i.l.bf16 %v7935_v32  ;;  %7939 = vrot.lane.b32.xlu0 %v7935_v32, %s8156_s9 }
 0x52a   :  { %7546 = vmatmul.mubr.msk.f32.vlgmr.msra.gmra.mxu0 %vm201_vm6, %v7916_v4  ;;  %7551 = vmatmul.mubr.msk.f32.vlgmr.msra.gmra.mxu1 %vm201_vm6, %v7917_v24 }
 0x52b   :  { %3058 = vrot.lane.b32.xlu1 %v7937_v37, %s8160_s13  ;;  %7554 = vmatpush3.xpose.msk.msra.mxu0 %vm201_vm6, %v7931_v36 }
 0x52c   :  { %7559 = vmatpush3.xpose.msk.msra.mxu1 %vm201_vm6, %v7932_v39  ;;  %7555 = vmatprep.mubr.msk.f32.mxu0 %vm8155_vm3, %v8154_v0 }
 0x52d   :  { %7560 = vmatprep.mubr.msk.f32.mxu1 %vm8155_vm3, %v8154_v0  ;;  %7563 = vmatprep.subr.mxu0 %v8154_v0  ;;  %v7945_v51 = vpop.permute.xlu1 %7944 }
 0x52e   :  { %7556 = vmatmul.mubr.msk.f32.vlgmr.msra.gmra.mxu0 %vm201_vm6, %v7921_v2  ;;  %7568 = vmatprep.subr.mxu1 %v8154_v0  ;;  %v7947_v52 = vunpack.i.h.bf16 %v7945_v51  ;;  %v7946_v54 = vunpack.i.l.bf16 %v7945_v51 }
 0x52f   :  { %7561 = vmatmul.mubr.msk.f32.vlgmr.msra.gmra.mxu1 %vm201_vm6, %v7922_v12  ;;  %7565 = vmatprep.mubr.msk.f32.mxu0 %vm8155_vm3, %v8154_v0 }
 0x530   :  { %7570 = vmatprep.mubr.msk.f32.mxu1 %vm8155_vm3, %v8154_v0  ;;  %7949 = vrot.lane.b32.xlu0 %v7915_v11, %s8160_s13 }
 0x531   :  { %v7955_v15 = vpop.permute.xlu1 %7954 }
 0x532   :  { %v7957_v62 = vunpack.i.h.bf16 %v7955_v15  ;;  %v7956_v63 = vunpack.i.l.bf16 %v7955_v15 }
 0x534   :  { %2982 = vrot.lane.b32.xlu0 %v7936_v38, %s8160_s13 }
 0x579   :  { %v1982_v40 = vpop.f32.mrf.mxu1 }
 0x57a   :  { %v2518_v56 = vsel %vm8312_vm7, %v1982_v40, 0.0 }
 0x57b   :  { %v7537_v41 = vpop.f32.mrf.mxu1 }
 0x57d   :  { %v2058_v42 = vpop.f32.mrf.mxu1 }
 0x57e   :  { %v2519_v57 = vsel %vm8312_vm7, %v2058_v42, 0.0 }
 0x57f   :  { %v7542_v45 = vpop.f32.mrf.mxu1 }
 0x59b   :  { %v7940_v48 = vpop.permute.xlu0 %7939 }
 0x59c   :  { %v7942_v49 = vunpack.i.h.bf16 %v7940_v48  ;;  %v7941_v50 = vunpack.i.l.bf16 %v7940_v48 }
 0x59d   :  { %v3059_v27 = vpop.permute.xlu1 %3058 }
 0x59e   :  { %7564 = vmatpush3.xpose.msk.msra.mxu0 %vm201_vm6, %v7941_v50  ;;  %7569 = vmatpush3.xpose.msk.msra.mxu1 %vm201_vm6, %v7942_v49 }
 0x59f   :  { %7573 = vmatprep.subr.mxu0 %v8154_v0  ;;  %7578 = vmatprep.subr.mxu1 %v8154_v0 }
 0x5a1   :  { %7566 = vmatmul.mubr.msk.f32.vlgmr.msra.gmra.mxu0 %vm201_vm6, %v7936_v38  ;;  %7571 = vmatmul.mubr.msk.f32.vlgmr.msra.gmra.mxu1 %vm201_vm6, %v7937_v37 }
 0x5a2   :  { %v7950_v55 = vpop.permute.xlu0 %7949  ;;  %7574 = vmatpush3.msra.mxu0 %v7946_v54  ;;  %7579 = vmatpush3.msra.mxu1 %v7947_v52  ;;  %v3528_v52 = vsub.f32 1.0, %v8402_v3 }
 0x5a3   :  { %7575 = vmatprep.mubr.msk.f32.mxu0 %vm8155_vm3, %v8154_v0  ;;  %7580 = vmatprep.mubr.msk.f32.mxu1 %vm8155_vm3, %v8154_v0  ;;  %v7952_v58 = vunpack.i.h.bf16 %v7950_v55  ;;  %v7951_v59 = vunpack.i.l.bf16 %v7950_v55  ;;  %v3529_v55 = vsub.f32 1.0, %v8425_v23 }
 0x5a4   :  { %7583 = vmatprep.subr.mxu0 %v8154_v0  ;;  %7588 = vmatprep.subr.mxu1 %v8154_v0  ;;  %v3530_v54 = vmul.f32 0.25, %v3528_v52 }
 0x5a5   :  { %7576 = vmatmul.mubr.msk.f32.vlgmr.msra.gmra.mxu0 %vm201_vm6, %v2518_v56  ;;  %7581 = vmatmul.mubr.msk.f32.vlgmr.msra.gmra.mxu1 %vm201_vm6, %v2519_v57  ;;  %v3526_v57 = vld [vmem:[#allocation2 + $0x10] sm:$0xff] }
 0x5a6   :  { %7584 = vmatpush3.msra.mxu0 %v7951_v59  ;;  %7589 = vmatpush3.msra.mxu1 %v7952_v58  ;;  %v2983_v24 = vpop.permute.xlu0 %2982  ;;  %v3532_v56 = vmul.f32 %v3530_v54, %v8388_v47  ;;  %v3531_v58 = vmul.f32 0.25, %v3529_v55 }
 0x5a7   :  { %7585 = vmatprep.mubr.msk.f32.mxu0 %vm8155_vm3, %v8154_v0  ;;  %7590 = vmatprep.mubr.msk.f32.mxu1 %vm8155_vm3, %v8154_v0 }
 0x5a8   :  { %7593 = vmatprep.subr.mxu0 %v8154_v0  ;;  %7598 = vmatprep.subr.mxu1 %v8154_v0  ;;  %v3533_v3 = vmul.f32 %v3531_v58, %v8398_v61 }
 0x5ea   :  { %v2134_v19 = vpop.f32.mrf.mxu0  ;;  %v2210_v60 = vpop.f32.mrf.mxu1 }
 0x5eb   :  { %v2520_v8 = vsel %vm8312_vm7, %v2134_v19, 0.0  ;;  %v2521_v9 = vsel %vm8312_vm7, %v2210_v60, 0.0 }
 0x5ec   :  { %v7547_v10 = vpop.f32.mrf.mxu0  ;;  %v7552_v14 = vpop.f32.mrf.mxu1  ;;  %7586 = vmatmul.mubr.msk.f32.vlgmr.msra.gmra.mxu0 %vm201_vm6, %v2520_v8  ;;  %7591 = vmatmul.mubr.msk.f32.vlgmr.msra.gmra.mxu1 %vm201_vm6, %v2521_v9 }
 0x5ed   :  { %7594 = vmatpush3.msra.mxu0 %v7956_v63  ;;  %7599 = vmatpush3.msra.mxu1 %v7957_v62 }
 0x5ee   :  { %v2286_v11 = vpop.f32.mrf.mxu0  ;;  %7595 = vmatprep.mubr.msk.f32.mxu0 %vm8155_vm3, %v8154_v0  ;;  %7600 = vmatprep.mubr.msk.f32.mxu1 %vm8155_vm3, %v8154_v0 }
 0x5ef   :  { %v2522_v12 = vsel %vm8312_vm7, %v2286_v11, 0.0  ;;  %v2362_v2 = vpop.f32.mrf.mxu1  ;;  %7603 = vmatprep.subr.mxu0 %v8154_v0  ;;  %7608 = vmatprep.subr.mxu1 %v8154_v0 }
 0x5f0   :  { %v2523_v4 = vsel %vm8312_vm7, %v2362_v2, 0.0  ;;  %v7557_v26 = vpop.f32.mrf.mxu0  ;;  %7596 = vmatmul.mubr.msk.f32.vlgmr.msra.gmra.mxu0 %vm201_vm6, %v2522_v12 }
 0x5f1   :  { %v7562_v28 = vpop.f32.mrf.mxu1  ;;  %7601 = vmatmul.mubr.msk.f32.vlgmr.msra.gmra.mxu1 %vm201_vm6, %v2523_v4  ;;  %7604 = vmatpush3.msra.mxu0 %v2983_v24 }
 0x5f2   :  { %7609 = vmatpush3.msra.mxu1 %v3059_v27  ;;  %7605 = vmatprep.mubr.msk.f32.mxu0 %vm8155_vm3, %v8154_v0 }
 0x5f3   :  { %7610 = vmatprep.mubr.msk.f32.mxu1 %vm8155_vm3, %v8154_v0  ;;  %7613 = vmatprep.subr.mxu0 %v8353_v22 }
 0x5f4   :  { %7618 = vmatprep.subr.mxu1 %v8361_v25 }
 0x661   :  { %v2438_v29 = vpop.f32.mrf.mxu0  ;;  %v2514_v7 = vpop.f32.mrf.mxu1 }
 0x662   :  { %v2524_v31 = vsel %vm8312_vm7, %v2438_v29, 0.0  ;;  %v2525_v32 = vsel %vm8312_vm7, %v2514_v7, 0.0  ;;  %v8620_v29 = vld [vmem:[#allocation5 + $0x18] sm:$0xff] }
 0x663   :  { %v7567_v36 = vpop.f32.mrf.mxu0  ;;  %v7572_v37 = vpop.f32.mrf.mxu1  ;;  %7606 = vmatmul.mubr.msk.f32.vlgmr.msra.gmra.mxu0 %vm201_vm6, %v2524_v31  ;;  %7611 = vmatmul.mubr.msk.f32.vlgmr.msra.gmra.mxu1 %vm201_vm6, %v2525_v32  ;;  %v8625_v31 = vld [vmem:[#allocation5 + $0x10] sm:$0xff] }
 0x664   :  { %7614 = vmatpush3.msra.mxu0 %v8353_v22  ;;  %7619 = vmatpush3.msra.mxu1 %v8361_v25  ;;  %v8632_v37 = vld [vmem:[#allocation5 + $0x8] sm:$0xff] }
 0x665   :  { %v2598_v38 = vpop.f32.mrf.mxu0  ;;  %v2674_v39 = vpop.f32.mrf.mxu1  ;;  %7623 = vmatprep.subr.mxu0 %v8368_v30  ;;  %7628 = vmatprep.subr.mxu1 %v8385_v46 }
 0x666   :  { %v3158_v40 = vadd.f32 %v8381_v43, %v2598_v38  ;;  %v3159_v41 = vadd.f32 %v8383_v44, %v2674_v39 }
 0x667   :  { %v7577_v42 = vpop.f32.mrf.mxu0  ;;  %v7582_v45 = vpop.f32.mrf.mxu1 }
 0x668   :  { %vm3166_vm8 = vcmp.gt.f32.partialorder %v3158_v40, 0.5  ;;  %vm3167_vm9 = vcmp.gt.f32.partialorder %v3159_v41, 0.5 }
 0x669   :  { %v7104_v48 = vsel %vm3167_vm9, 1.0, %v8154_v0  ;;  %v7103_v22 = vsel %vm3166_vm8, 1.0, %v8154_v0 }
 0x66a   :  { %v4876_v49 = vsub.f32 1.0, %v7104_v48  ;;  %7615 = vmatprep.mubr.msk.f32.mxu0 %vm201_vm6, %v7103_v22  ;;  %v4875_v25 = vsub.f32 1.0, %v7103_v22 }
 0x66b   :  { %7616 = vmatmul.mubr.msk.f32.vlgmr.msra.gmra.mxu0 %vm201_vm6, %v7104_v48 }
 0x66c   :  { %7624 = vmatpush3.msra.mxu0 %v8368_v30  ;;  %v4883_v50 = vmul.f32 0.25, %v4875_v25  ;;  %v4884_v43 = vmul.f32 0.25, %v4876_v49 }
 0x66d   :  { %7633 = vmatprep.subr.mxu0 %v8211_v1  ;;  %v8595_v1 = vadd.f32 %v3532_v56, %v3526_v57 }
 0x66e   :  { %v8586_v44 = vmul.f32 %v4883_v50, %v3158_v40  ;;  %v8588_v51 = vmul.f32 %v4884_v43, %v3159_v41  ;;  %v8641_v40 = vld [vmem:[#allocation5] sm:$0xff] }
 0x66f   :  { %vm3536_vm12 = vcmp.gt.f32.partialorder %v8595_v1, 0.5 }
 0x670   :  { %v8608_v24 = vsel %vm3536_vm12, 1.0, %v8154_v0 }
 0x6ac   :  { %v2750_v59 = vpop.f32.mrf.mxu0  ;;  %v2826_v15 = vpop.f32.mrf.mxu1 }
 0x6ad   :  { %v3160_v30 = vadd.f32 %v8405_v5, %v2750_v59  ;;  %v3161_v19 = vadd.f32 %v8407_v6, %v2826_v15  ;;  %v3527_v6 = vld [vmem:[#allocation2 + $0x30] sm:$0xff] }
 0x6ae   :  { %v7587_v60 = vpop.f32.mrf.mxu0  ;;  %v7592_v62 = vpop.f32.mrf.mxu1  ;;  %v8610_v4 = vadd.f32 %v3533_v3, %v3527_v6 }
 0x6af   :  { %vm3168_vm10 = vcmp.gt.f32.partialorder %v3160_v30, 0.5  ;;  %vm3169_vm11 = vcmp.gt.f32.partialorder %v3161_v19, 0.5  ;;  %v3624_v60 = vsub.f32 1.0, %v8463_v21  ;;  %v3623_v62 = vsub.f32 1.0, %v8466_v17 }
 0x6b0   :  { %v7106_v23 = vsel %vm3169_vm11, 1.0, %v8154_v0  ;;  %v2902_v63 = vpop.f32.mrf.mxu0  ;;  %v7105_v47 = vsel %vm3168_vm10, 1.0, %v8154_v0  ;;  %vm3537_vm15 = vcmp.gt.f32.partialorder %v8610_v4, 0.5 }
 0x6b1   :  { %v4878_v8 = vsub.f32 1.0, %v7106_v23  ;;  %v3162_v9 = vadd.f32 %v8417_v16, %v2902_v63  ;;  %v2978_v10 = vpop.f32.mrf.mxu1  ;;  %7620 = vmatprep.mubr.msk.f32.mxu1 %vm201_vm6, %v7105_v47  ;;  %v4877_v5 = vsub.f32 1.0, %v7105_v47  ;;  %v8639_v39 = vsel %vm3537_vm15, 1.0, %v8154_v0 }
 0x6b2   :  { %v3163_v14 = vadd.f32 %v8420_v18, %v2978_v10  ;;  %v7597_v11 = vpop.f32.mrf.mxu0  ;;  %7621 = vmatmul.mubr.msk.f32.vlgmr.msra.gmra.mxu1 %vm201_vm6, %v7106_v23  ;;  %v3626_v3 = vmul.f32 0.25, %v3624_v60  ;;  %v3625_v63 = vmul.f32 0.25, %v3623_v62 }
 0x6b3   :  { %vm3170_vm13 = vcmp.gt.f32.partialorder %v3162_v9, 0.5  ;;  %v7602_v61 = vpop.f32.mrf.mxu1  ;;  %7629 = vmatpush3.msra.mxu1 %v8385_v46  ;;  %v4885_v12 = vmul.f32 0.25, %v4877_v5  ;;  %v4886_v2 = vmul.f32 0.25, %v4878_v8  ;;  %v8668_v8 = vld [vmem:[%s9023_s2] ss:$0 sm:$0xff] }
 0x6b4   :  { %vm3171_vm14 = vcmp.gt.f32.partialorder %v3163_v14, 0.5  ;;  %v7107_v16 = vsel %vm3170_vm13, 1.0, %v8154_v0  ;;  %7644 = vmatprep.subr.mxu1 %v8154_v0  ;;  %v3628_v10 = vmul.f32 %v3626_v3, %v8455_v13  ;;  %v3627_v17 = vmul.f32 %v3625_v63, %v8459_v20 }
 0x6b5   :  { %v7108_v18 = vsel %vm3171_vm14, 1.0, %v8154_v0  ;;  %7625 = vmatprep.mubr.msk.f32.mxu0 %vm201_vm6, %v7107_v16  ;;  %v4879_v26 = vsub.f32 1.0, %v7107_v16  ;;  %v8615_v27 = vmul.f32 %v4885_v12, %v3160_v30  ;;  %v8617_v46 = vmul.f32 %v4886_v2, %v3161_v19 }
 0x6b6   :  { %v4880_v28 = vsub.f32 1.0, %v7108_v18  ;;  %7626 = vmatmul.mubr.msk.f32.vlgmr.msra.gmra.mxu0 %vm201_vm6, %v7108_v18 }
 0x6b7   :  { %7634 = vmatpush3.msra.mxu0 %v8620_v29  ;;  %7641 = vmatprep.mubr.msk.f32.mxu0 %vm97_vm0, %v8608_v24  ;;  %v4887_v7 = vmul.f32 0.25, %v4879_v26 }
 0x6b8   :  { %7635 = vmatprep.subr.mxu0 %v8625_v31  ;;  %v4888_v32 = vmul.f32 0.25, %v4880_v28 }
 0x6b9   :  { %7636 = vmatpush3.msra.mxu0 %v8625_v31  ;;  %v8630_v36 = vmul.f32 %v4887_v7, %v3162_v9 }
 0x6ba   :  { %7637 = vmatprep.subr.mxu0 %v8632_v37  ;;  %v8635_v38 = vmul.f32 %v4888_v32, %v3163_v14 }
 0x6bb   :  { %7638 = vmatpush3.msra.mxu0 %v8632_v37 }
 0x6bc   :  { %7639 = vmatprep.subr.mxu0 %v8641_v40 }
 0x6bd   :  { %7640 = vmatpush3.msra.mxu0 %v8641_v40 }
 0x6be   :  { %7642 = vmatmul.mubr.msk.f32.vlgmr.msra.gmra.mxu0 %vm97_vm0, %v8639_v39  ;;  %7654 = vmatprep.subr.mxu0 %v8154_v0 }
 0x6bf   :  { %7656 = vmatprep.mubr.msk.f32.mxu0 %vm8155_vm3, %v8154_v0 }
 0x723   :  { %v3054_v41 = vpop.f32.mrf.mxu0  ;;  %v3130_v42 = vpop.f32.mrf.mxu1 }
 0x724   :  { %v3164_v45 = vadd.f32 %v8440_v33, %v3054_v41  ;;  %v3165_v48 = vadd.f32 %v8442_v34, %v3130_v42 }
 0x725   :  { %v7607_v22 = vpop.f32.mrf.mxu0  ;;  %v7612_v49 = vpop.f32.mrf.mxu1 }
 0x726   :  { %vm3172_vm1 = vcmp.gt.f32.partialorder %v3164_v45, 0.5  ;;  %vm3173_vm2 = vcmp.gt.f32.partialorder %v3165_v48, 0.5 }
 0x727   :  { %v7110_v25 = vsel %vm3173_vm2, 1.0, %v8154_v0  ;;  %v7109_v50 = vsel %vm3172_vm1, 1.0, %v8154_v0 }
 0x728   :  { %v4882_v43 = vsub.f32 1.0, %v7110_v25  ;;  %7630 = vmatprep.mubr.msk.f32.mxu1 %vm201_vm6, %v7109_v50  ;;  %v4881_v52 = vsub.f32 1.0, %v7109_v50 }
 0x729   :  { %7631 = vmatmul.mubr.msk.f32.vlgmr.msra.gmra.mxu1 %vm201_vm6, %v7110_v25 }
 0x72a   :  { %7646 = vmatprep.mubr.msk.f32.mxu1 %vm8155_vm3, %v8154_v0  ;;  %v4889_v33 = vmul.f32 0.25, %v4881_v52  ;;  %v4890_v54 = vmul.f32 0.25, %v4882_v43 }
 0x72b   :  { %v7617_v56 = vpop.f32.mrf.mxu0 }
 0x72c   :  { %v8658_v34 = vmul.f32 %v4889_v33, %v3164_v45  ;;  %v8660_v55 = vmul.f32 %v4890_v54, %v3165_v48  ;;  %v3272_v58 = vadd.f32 %v7617_v56, %v8447_v35 }
 0x72d   :  { %v3262_v59 = vpop.f32.mrf.mxu0 }
 0x72e   :  { %v3271_v12 = vadd.f32 %v8447_v35, %v3262_v59 }
 0x772   :  { %v7622_v57 = vpop.f32.mrf.mxu1 }
 0x773   :  { %v3355_v15 = vadd.f32 %v7622_v57, %v3272_v58 }
 0x774   :  { %v3345_v20 = vpop.f32.mrf.mxu1 }
 0x775   :  { %v3354_v2 = vadd.f32 %v3345_v20, %v3271_v12 }
 0x776   :  { %v7627_v30 = vpop.f32.mrf.mxu0 }
 0x777   :  { %v3438_v19 = vadd.f32 %v7627_v30, %v3355_v15 }
 0x778   :  { %v3428_v23 = vpop.f32.mrf.mxu0 }
 0x779   :  { %v3437_v18 = vadd.f32 %v3428_v23, %v3354_v2 }
 0x77e   :  { %v7643_v47 = vpop.f32.mrf.mxu0 }
 0x77f   :  { %v3620_v9 = vadd.f32 %v8668_v8, %v7643_v47 }
 0x780   :  { %v3614_v5 = vpop.f32.mrf.mxu0 }
 0x781   :  { %v8672_v6 = vadd.f32 %v3628_v10, %v3620_v9  ;;  %v3615_v21 = vadd.f32 %v8668_v8, %v3614_v5 }
 0x783   :  { %vm3632_vm4 = vcmp.gt.f32.partialorder %v8672_v6, 0.5  ;;  %v8677_v14 = vadd.f32 %v3627_v17, %v3615_v21 }
 0x784   :  { %v8681_v11 = vsel %vm3632_vm4, 1.0, %v8154_v0 }
 0x785   :  { %vm3631_vm5 = vcmp.gt.f32.partialorder %v8677_v14, 0.5 }
 0x786   :  { %v8684_v61 = vsel %vm3631_vm5, 1.0, %v8154_v0 }
 0x787   :  { %v7963_v13 = vpack.i.bf16 %v8681_v11, %v8684_v61 }
 0x789   :  { %7964 = vrot.lane.b32.xlu1 %v7963_v13, %s8158_s11  ;;  %7959 = vrot.lane.b32.xlu0 %v7963_v13, %s8157_s10 }
 0x78d   :  { %3727 = vrot.lane.b32.xlu1 %v8681_v11, %s8156_s9  ;;  %3651 = vrot.lane.b32.xlu0 %v8684_v61, %s8156_s9 }
 0x7e9   :  { %v7632_v16 = vpop.f32.mrf.mxu1 }
 0x7ea   :  { %v3521_v26 = vadd.f32 %v7632_v16, %v3438_v19 }
 0x7eb   :  { %v3511_v28 = vpop.f32.mrf.mxu1 }
 0x7ec   :  { %3524 = vst.msk [vmem:[#allocation8 + $0x28] sm:$0xff] %vm97_vm0, %v3521_v26  ;;  %v3520_v7 = vadd.f32 %v3511_v28, %v3437_v18 }
 0x7ee   :  { %3523 = vst.msk [vmem:[#allocation8 + $0x8] sm:$0xff] %vm97_vm0, %v3520_v7 }
 0x7fb   :  { %v7965_v32 = vpop.permute.xlu1 %7964  ;;  %v7960_v41 = vpop.permute.xlu0 %7959 }
 0x7fc   :  { %v7967_v42 = vunpack.i.h.bf16 %v7965_v32  ;;  %v7966_v45 = vunpack.i.l.bf16 %v7965_v32  ;;  %v7962_v48 = vunpack.i.h.bf16 %v7960_v41  ;;  %v7961_v22 = vunpack.i.l.bf16 %v7960_v41  ;;  %7974 = vrot.lane.b32.xlu1 %v7965_v32, %s8156_s9  ;;  %7969 = vrot.lane.b32.xlu0 %v7960_v41, %s8156_s9 }
 0x7ff   :  { %v3652_v49 = vpop.permute.xlu0 %3651  ;;  %v3728_v35 = vpop.permute.xlu1 %3727 }
 0x800   :  { %7645 = vmatpush3.xpose.msk.msra.mxu1 %vm201_vm6, %v3652_v49  ;;  %7979 = vrot.lane.b32.xlu0 %v7963_v13, %s8159_s12 }
 0x801   :  { %7649 = vmatprep.subr.mxu1 %v8154_v0 }
 0x803   :  { %7647 = vmatmul.mubr.msk.f32.vlgmr.msra.gmra.mxu1 %vm201_vm6, %v8684_v61 }
 0x804   :  { %7650 = vmatpush3.xpose.msk.msra.mxu1 %vm201_vm6, %v3728_v35  ;;  %7651 = vmatprep.mubr.msk.f32.mxu1 %vm8155_vm3, %v8154_v0 }
 0x805   :  { %7659 = vmatprep.subr.mxu1 %v8154_v0  ;;  %7989 = vrot.lane.b32.xlu0 %v7963_v13, %s8160_s13 }
 0x807   :  { %7652 = vmatmul.mubr.msk.f32.vlgmr.msra.gmra.mxu1 %vm201_vm6, %v8681_v11 }
 0x808   :  { %7661 = vmatprep.mubr.msk.f32.mxu1 %vm8155_vm3, %v8154_v0 }
 0x809   :  { %7999 = vrot.lane.b32.xlu0 %v7965_v32, %s8160_s13 }
 0x86e   :  { %v7970_v25 = vpop.permute.xlu0 %7969  ;;  %v7975_v52 = vpop.permute.xlu1 %7974 }
 0x86f   :  { %v7972_v50 = vunpack.i.h.bf16 %v7970_v25  ;;  %v7971_v43 = vunpack.i.l.bf16 %v7970_v25  ;;  %v7976_v54 = vunpack.i.l.bf16 %v7975_v52  ;;  %v7977_v58 = vunpack.i.h.bf16 %v7975_v52  ;;  %v8784_v25 = vld [vmem:[#allocation7] sm:$0xff] }
 0x871   :  { %7655 = vmatpush3.xpose.msk.msra.mxu0 %vm201_vm6, %v7971_v43  ;;  %7660 = vmatpush3.xpose.msk.msra.mxu1 %vm201_vm6, %v7972_v50  ;;  %v8787_v50 = vld [vmem:[#allocation7 + $0x8] sm:$0xff] }
 0x872   :  { %v7980_v33 = vpop.permute.xlu0 %7979  ;;  %7664 = vmatprep.subr.mxu0 %v8154_v0  ;;  %7669 = vmatprep.subr.mxu1 %v8154_v0 }
 0x873   :  { %v7982_v56 = vunpack.i.h.bf16 %v7980_v33  ;;  %v7981_v57 = vunpack.i.l.bf16 %v7980_v33  ;;  %7984 = vrot.lane.b32.xlu1 %v7980_v33, %s8156_s9 }
 0x874   :  { %7657 = vmatmul.mubr.msk.f32.vlgmr.msra.gmra.mxu0 %vm201_vm6, %v7961_v22  ;;  %7662 = vmatmul.mubr.msk.f32.vlgmr.msra.gmra.mxu1 %vm201_vm6, %v7962_v48 }
 0x875   :  { %4799 = vrot.lane.b32.xlu0 %v7982_v56, %s8160_s13  ;;  %7665 = vmatpush3.xpose.msk.msra.mxu0 %vm201_vm6, %v7976_v54 }
 0x876   :  { %7670 = vmatpush3.xpose.msk.msra.mxu1 %vm201_vm6, %v7977_v58  ;;  %7666 = vmatprep.mubr.msk.f32.mxu0 %vm8155_vm3, %v8154_v0 }
 0x877   :  { %7671 = vmatprep.mubr.msk.f32.mxu1 %vm8155_vm3, %v8154_v0  ;;  %7674 = vmatprep.subr.mxu0 %v8154_v0  ;;  %v7990_v23 = vpop.permute.xlu0 %7989 }
 0x878   :  { %7667 = vmatmul.mubr.msk.f32.vlgmr.msra.gmra.mxu0 %vm201_vm6, %v7966_v45  ;;  %7679 = vmatprep.subr.mxu1 %v8154_v0  ;;  %v7992_v63 = vunpack.i.h.bf16 %v7990_v23  ;;  %v7991_v47 = vunpack.i.l.bf16 %v7990_v23 }
 0x879   :  { %7672 = vmatmul.mubr.msk.f32.vlgmr.msra.gmra.mxu1 %vm201_vm6, %v7967_v42  ;;  %7676 = vmatprep.mubr.msk.f32.mxu0 %vm8155_vm3, %v8154_v0 }
 0x87a   :  { %7681 = vmatprep.mubr.msk.f32.mxu1 %vm8155_vm3, %v8154_v0  ;;  %7994 = vrot.lane.b32.xlu1 %v7960_v41, %s8160_s13 }
 0x87b   :  { %v8000_v13 = vpop.permute.xlu0 %7999 }
 0x87c   :  { %v8002_v2 = vunpack.i.h.bf16 %v8000_v13  ;;  %v8001_v16 = vunpack.i.l.bf16 %v8000_v13  ;;  %v5270_v13 = vsub.f32 1.0, %v8639_v39 }
 0x87e   :  { %4723 = vrot.lane.b32.xlu1 %v7981_v57, %s8160_s13 }
 0x8c3   :  { %v3723_v59 = vpop.f32.mrf.mxu1 }
 0x8c4   :  { %v4259_v10 = vsel %vm8312_vm7, %v3723_v59, 0.0 }
 0x8c5   :  { %v7648_v15 = vpop.f32.mrf.mxu1 }
 0x8c6   :  { %v8798_v15 = vld [vmem:[#allocation7 + $0x10] sm:$0xff] }
 0x8c7   :  { %v3799_v30 = vpop.f32.mrf.mxu1 }
 0x8c8   :  { %v4260_v5 = vsel %vm8312_vm7, %v3799_v30, 0.0  ;;  %v8801_v30 = vld [vmem:[#allocation7 + $0x18] sm:$0xff] }
 0x8c9   :  { %v7653_v19 = vpop.f32.mrf.mxu1 }
 0x8e5   :  { %v7985_v60 = vpop.permute.xlu1 %7984 }
 0x8e6   :  { %v7987_v62 = vunpack.i.h.bf16 %v7985_v60  ;;  %v7986_v3 = vunpack.i.l.bf16 %v7985_v60 }
 0x8e7   :  { %v4800_v49 = vpop.permute.xlu0 %4799 }
 0x8e8   :  { %7675 = vmatpush3.xpose.msk.msra.mxu0 %vm201_vm6, %v7986_v3  ;;  %7680 = vmatpush3.xpose.msk.msra.mxu1 %vm201_vm6, %v7987_v62 }
 0x8e9   :  { %7684 = vmatprep.subr.mxu0 %v8154_v0  ;;  %7689 = vmatprep.subr.mxu1 %v8154_v0 }
 0x8eb   :  { %7677 = vmatmul.mubr.msk.f32.vlgmr.msra.gmra.mxu0 %vm201_vm6, %v7981_v57  ;;  %7682 = vmatmul.mubr.msk.f32.vlgmr.msra.gmra.mxu1 %vm201_vm6, %v7982_v56 }
 0x8ec   :  { %v7995_v9 = vpop.permute.xlu1 %7994  ;;  %7685 = vmatpush3.msra.mxu0 %v7991_v47  ;;  %7690 = vmatpush3.msra.mxu1 %v7992_v63 }
 0x8ed   :  { %7686 = vmatprep.mubr.msk.f32.mxu0 %vm8155_vm3, %v8154_v0  ;;  %7691 = vmatprep.mubr.msk.f32.mxu1 %vm8155_vm3, %v8154_v0  ;;  %v7997_v21 = vunpack.i.h.bf16 %v7995_v9  ;;  %v7996_v17 = vunpack.i.l.bf16 %v7995_v9 }
 0x8ee   :  { %7694 = vmatprep.subr.mxu0 %v8154_v0  ;;  %7699 = vmatprep.subr.mxu1 %v8154_v0 }
 0x8ef   :  { %7687 = vmatmul.mubr.msk.f32.vlgmr.msra.gmra.mxu0 %vm201_vm6, %v4259_v10  ;;  %7692 = vmatmul.mubr.msk.f32.vlgmr.msra.gmra.mxu1 %vm201_vm6, %v4260_v5 }
 0x8f0   :  { %7695 = vmatpush3.msra.mxu0 %v7996_v17  ;;  %7700 = vmatpush3.msra.mxu1 %v7997_v21  ;;  %v4724_v45 = vpop.permute.xlu1 %4723  ;;  %v5269_v21 = vsub.f32 1.0, %v8608_v24 }
 0x8f1   :  { %7696 = vmatprep.mubr.msk.f32.mxu0 %vm8155_vm3, %v8154_v0  ;;  %7701 = vmatprep.mubr.msk.f32.mxu1 %vm8155_vm3, %v8154_v0 }
 0x8f2   :  { %7704 = vmatprep.subr.mxu0 %v8154_v0  ;;  %7709 = vmatprep.subr.mxu1 %v8154_v0  ;;  %v5271_v17 = vmul.f32 0.25, %v5269_v21 }
 0x934   :  { %v3875_v20 = vpop.f32.mrf.mxu0  ;;  %v3951_v12 = vpop.f32.mrf.mxu1 }
 0x935   :  { %v4261_v18 = vsel %vm8312_vm7, %v3875_v20, 0.0  ;;  %v4262_v26 = vsel %vm8312_vm7, %v3951_v12, 0.0  ;;  %v5273_v20 = vmul.f32 %v5271_v17, %v8595_v1  ;;  %v5267_v12 = vld [vmem:[#allocation2 + $0x18] sm:$0xff] }
 0x936   :  { %v7658_v28 = vpop.f32.mrf.mxu0  ;;  %v7663_v7 = vpop.f32.mrf.mxu1  ;;  %7697 = vmatmul.mubr.msk.f32.vlgmr.msra.gmra.mxu0 %vm201_vm6, %v4261_v18  ;;  %7702 = vmatmul.mubr.msk.f32.vlgmr.msra.gmra.mxu1 %vm201_vm6, %v4262_v26 }
 0x937   :  { %7705 = vmatpush3.msra.mxu0 %v8001_v16  ;;  %7710 = vmatpush3.msra.mxu1 %v8002_v2  ;;  %v5272_v2 = vmul.f32 0.25, %v5270_v13  ;;  %v5275_v7 = vadd.f32 %v5273_v20, %v5267_v12 }
 0x938   :  { %v4027_v32 = vpop.f32.mrf.mxu0  ;;  %7706 = vmatprep.mubr.msk.f32.mxu0 %vm8155_vm3, %v8154_v0  ;;  %7711 = vmatprep.mubr.msk.f32.mxu1 %vm8155_vm3, %v8154_v0 }
 0x939   :  { %v4263_v41 = vsel %vm8312_vm7, %v4027_v32, 0.0  ;;  %v4103_v42 = vpop.f32.mrf.mxu1  ;;  %7714 = vmatprep.subr.mxu0 %v8154_v0  ;;  %7719 = vmatprep.subr.mxu1 %v8154_v0  ;;  %v5274_v1 = vmul.f32 %v5272_v2, %v8610_v4  ;;  %vm5277_vm12 = vcmp.gt.f32.partialorder %v5275_v7, 0.5  ;;  %v8871_v2 = vld [vmem:[%s9025_s4] ss:$0 sm:$0xff]  ;;  %s8161_s4 = smov [#allocation8]  }
 0x93a   :  { %v4264_v48 = vsel %vm8312_vm7, %v4103_v42, 0.0  ;;  %v7668_v22 = vpop.f32.mrf.mxu0  ;;  %7707 = vmatmul.mubr.msk.f32.vlgmr.msra.gmra.mxu0 %vm201_vm6, %v4263_v41  ;;  %s7012_s19 = sshll.u32 %s8161_s4, 4  ;;  %s7013_s19 = int_to_ptr.vmem [resolvable:$true] %s7012_s19 }
 0x93b   :  { %v7673_v35 = vpop.f32.mrf.mxu1  ;;  %7712 = vmatmul.mubr.msk.f32.vlgmr.msra.gmra.mxu1 %vm201_vm6, %v4264_v48  ;;  %7715 = vmatpush3.msra.mxu0 %v4724_v45  ;;  %s8123_s20 = scalar_lea.vmem %s7013_s19, 1024  ;;  %p8128_p2 = scmp.lt.s32.totalorder %s7013_s19, %s7013_s19 }
 0x93c   :  { %7720 = vmatpush3.msra.mxu1 %v4800_v49  ;;  %7716 = vmatprep.mubr.msk.f32.mxu0 %vm8155_vm3, %v8154_v0  ;;  %p8124_p1 = scmp.ne.s32.totalorder %s7013_s19, %s8123_s20  ;;  %p8129_p3 = scmp.lt.s32.totalorder %s8123_s20, %s8123_s20 }
 0x93d   :  { %7721 = vmatprep.mubr.msk.f32.mxu1 %vm8155_vm3, %v8154_v0  ;;  %7724 = vmatprep.subr.mxu0 %v8784_v25 }
 0x93e   :  { %7729 = vmatprep.subr.mxu1 %v8787_v50  ;;  %p8130_p4 = por %p8129_p3, %p8128_p2 }
 0x940   :  { %p8131_p5 = pnand %p8130_p4, %p8124_p1 }
 0x9ab   :  { %v4179_v43 = vpop.f32.mrf.mxu0  ;;  %v4255_v52 = vpop.f32.mrf.mxu1 }
 0x9ac   :  { %v4265_v33 = vsel %vm8312_vm7, %v4179_v43, 0.0  ;;  %v4266_v54 = vsel %vm8312_vm7, %v4255_v52, 0.0 }
 0x9ad   :  { %v7678_v56 = vpop.f32.mrf.mxu0  ;;  %v7683_v57 = vpop.f32.mrf.mxu1  ;;  %7717 = vmatmul.mubr.msk.f32.vlgmr.msra.gmra.mxu0 %vm201_vm6, %v4265_v33  ;;  %7722 = vmatmul.mubr.msk.f32.vlgmr.msra.gmra.mxu1 %vm201_vm6, %v4266_v54  ;;  %v7165_v33 = vsel %vm5277_vm12, 1.0, %v8154_v0 }
 0x9ae   :  { %7725 = vmatpush3.msra.mxu0 %v8784_v25  ;;  %7730 = vmatpush3.msra.mxu1 %v8787_v50 }
 0x9af   :  { %v4339_v58 = vpop.f32.mrf.mxu0  ;;  %v4415_v59 = vpop.f32.mrf.mxu1  ;;  %7734 = vmatprep.subr.mxu0 %v8798_v15  ;;  %7739 = vmatprep.subr.mxu1 %v8801_v30 }
 0x9b0   :  { %v4899_v19 = vadd.f32 %v8586_v44, %v4339_v58  ;;  %v4900_v60 = vadd.f32 %v8588_v51, %v4415_v59 }
 0x9b1   :  { %v7688_v62 = vpop.f32.mrf.mxu0  ;;  %v7693_v3 = vpop.f32.mrf.mxu1 }
 0x9b2   :  { %vm4907_vm8 = vcmp.gt.f32.partialorder %v4899_v19, 0.5  ;;  %vm4908_vm9 = vcmp.gt.f32.partialorder %v4900_v60, 0.5 }
 0x9b3   :  { %v7150_v23 = vsel %vm4908_vm9, 1.0, %v8154_v0  ;;  %v7149_v63 = vsel %vm4907_vm8, 1.0, %v8154_v0 }
 0x9b4   :  { %v6617_v47 = vsub.f32 1.0, %v7150_v23  ;;  %7726 = vmatprep.mubr.msk.f32.mxu0 %vm201_vm6, %v7149_v63  ;;  %v6616_v9 = vsub.f32 1.0, %v7149_v63 }
 0x9b5   :  { %7727 = vmatmul.mubr.msk.f32.vlgmr.msra.gmra.mxu0 %vm201_vm6, %v7150_v23 }
 0x9b6   :  { %7735 = vmatpush3.msra.mxu0 %v8798_v15  ;;  %v6624_v10 = vmul.f32 0.25, %v6616_v9  ;;  %v6625_v44 = vmul.f32 0.25, %v6617_v47 }
 0x9b7   :  { %7744 = vmatprep.subr.mxu0 %v8620_v29 }
 0x9b8   :  { %v8812_v51 = vmul.f32 %v6624_v10, %v4899_v19  ;;  %v8814_v5 = vmul.f32 %v6625_v44, %v4900_v60 }
 0x9f6   :  { %v4491_v16 = vpop.f32.mrf.mxu0  ;;  %v4567_v18 = vpop.f32.mrf.mxu1 }
 0x9f7   :  { %v4901_v26 = vadd.f32 %v8615_v27, %v4491_v16  ;;  %v4902_v28 = vadd.f32 %v8617_v46, %v4567_v18  ;;  %v5268_v46 = vld [vmem:[#allocation2 + $0x38] sm:$0xff] }
 0x9f8   :  { %v7698_v32 = vpop.f32.mrf.mxu0  ;;  %v7703_v41 = vpop.f32.mrf.mxu1  ;;  %v5276_v54 = vadd.f32 %v5274_v1, %v5268_v46 }
 0x9f9   :  { %vm4909_vm10 = vcmp.gt.f32.partialorder %v4901_v26, 0.5  ;;  %vm4910_vm11 = vcmp.gt.f32.partialorder %v4902_v28, 0.5  ;;  %v5365_v32 = vsub.f32 1.0, %v8681_v11  ;;  %v5364_v41 = vsub.f32 1.0, %v8684_v61 }
 0x9fa   :  { %v7152_v24 = vsel %vm4910_vm11, 1.0, %v8154_v0  ;;  %v4643_v42 = vpop.f32.mrf.mxu0  ;;  %v7151_v39 = vsel %vm4909_vm10, 1.0, %v8154_v0  ;;  %vm5278_vm15 = vcmp.gt.f32.partialorder %v5276_v54, 0.5 }
 0x9fb   :  { %v6619_v45 = vsub.f32 1.0, %v7152_v24  ;;  %v4903_v48 = vadd.f32 %v8630_v36, %v4643_v42  ;;  %v4719_v22 = vpop.f32.mrf.mxu1  ;;  %7731 = vmatprep.mubr.msk.f32.mxu1 %vm201_vm6, %v7151_v39  ;;  %v6618_v27 = vsub.f32 1.0, %v7151_v39  ;;  %v7166_v23 = vsel %vm5278_vm15, 1.0, %v8154_v0 }
 0x9fc   :  { %v4904_v49 = vadd.f32 %v8635_v38, %v4719_v22  ;;  %v7708_v35 = vpop.f32.mrf.mxu0  ;;  %7732 = vmatmul.mubr.msk.f32.vlgmr.msra.gmra.mxu1 %vm201_vm6, %v7152_v24  ;;  %v5367_v24 = vmul.f32 0.25, %v5365_v32  ;;  %v5366_v39 = vmul.f32 0.25, %v5364_v41 }
 0x9fd   :  { %vm4911_vm13 = vcmp.gt.f32.partialorder %v4903_v48, 0.5  ;;  %v7713_v43 = vpop.f32.mrf.mxu1  ;;  %7740 = vmatpush3.msra.mxu1 %v8801_v30  ;;  %v6626_v52 = vmul.f32 0.25, %v6618_v27  ;;  %v6627_v4 = vmul.f32 0.25, %v6619_v45 }
 0x9fe   :  { %vm4912_vm14 = vcmp.gt.f32.partialorder %v4904_v49, 0.5  ;;  %v7153_v36 = vsel %vm4911_vm13, 1.0, %v8154_v0  ;;  %7755 = vmatprep.subr.mxu1 %v8154_v0 }
 0x9ff   :  { %v7154_v56 = vsel %vm4912_vm14, 1.0, %v8154_v0  ;;  %7736 = vmatprep.mubr.msk.f32.mxu0 %vm201_vm6, %v7153_v36  ;;  %v6620_v38 = vsub.f32 1.0, %v7153_v36  ;;  %v8834_v57 = vmul.f32 %v6626_v52, %v4901_v26  ;;  %v8836_v58 = vmul.f32 %v6627_v4, %v4902_v28 }
 0xa00   :  { %v6621_v59 = vsub.f32 1.0, %v7154_v56  ;;  %7737 = vmatmul.mubr.msk.f32.vlgmr.msra.gmra.mxu0 %vm201_vm6, %v7154_v56 }
 0xa01   :  { %7745 = vmatpush3.msra.mxu0 %v8620_v29  ;;  %7752 = vmatprep.mubr.msk.f32.mxu0 %vm97_vm0, %v7165_v33  ;;  %v6628_v19 = vmul.f32 0.25, %v6620_v38 }
 0xa02   :  { %7746 = vmatprep.subr.mxu0 %v8625_v31  ;;  %v6629_v60 = vmul.f32 0.25, %v6621_v59 }
 0xa03   :  { %7747 = vmatpush3.msra.mxu0 %v8625_v31  ;;  %v8843_v62 = vmul.f32 %v6628_v19, %v4903_v48  ;;  %v5369_v48 = vmul.f32 %v5367_v24, %v8672_v6 }
 0xa04   :  { %7748 = vmatprep.subr.mxu0 %v8632_v37  ;;  %v8846_v3 = vmul.f32 %v6629_v60, %v4904_v49  ;;  %v5368_v49 = vmul.f32 %v5366_v39, %v8677_v14 }
 0xa05   :  { %7749 = vmatpush3.msra.mxu0 %v8632_v37 }
 0xa06   :  { %7750 = vmatprep.subr.mxu0 %v8641_v40 }
 0xa07   :  { %7751 = vmatpush3.msra.mxu0 %v8641_v40 }
 0xa08   :  { %7753 = vmatmul.mubr.msk.f32.vlgmr.msra.gmra.mxu0 %vm97_vm0, %v7166_v23  ;;  %7765 = vmatprep.subr.mxu0 %v8154_v0 }
 0xa09   :  { %7767 = vmatprep.mubr.msk.f32.mxu0 %vm8155_vm3, %v8154_v0 }
 0xa6d   :  { %v4795_v29 = vpop.f32.mrf.mxu0  ;;  %v4871_v31 = vpop.f32.mrf.mxu1 }
 0xa6e   :  { %v4905_v63 = vadd.f32 %v8658_v34, %v4795_v29  ;;  %v4906_v47 = vadd.f32 %v8660_v55, %v4871_v31 }
 0xa6f   :  { %v7718_v37 = vpop.f32.mrf.mxu0  ;;  %v7723_v9 = vpop.f32.mrf.mxu1 }
 0xa70   :  { %vm4913_vm1 = vcmp.gt.f32.partialorder %v4905_v63, 0.5  ;;  %vm4914_vm2 = vcmp.gt.f32.partialorder %v4906_v47, 0.5 }
 0xa71   :  { %v7156_v10 = vsel %vm4914_vm2, 1.0, %v8154_v0  ;;  %v7155_v40 = vsel %vm4913_vm1, 1.0, %v8154_v0 }
 0xa72   :  { %v6623_v44 = vsub.f32 1.0, %v7156_v10  ;;  %7741 = vmatprep.mubr.msk.f32.mxu1 %vm201_vm6, %v7155_v40  ;;  %v6622_v21 = vsub.f32 1.0, %v7155_v40 }
 0xa73   :  { %7742 = vmatmul.mubr.msk.f32.vlgmr.msra.gmra.mxu1 %vm201_vm6, %v7156_v10 }
 0xa74   :  { %7757 = vmatprep.mubr.msk.f32.mxu1 %vm8155_vm3, %v8154_v0  ;;  %v6630_v34 = vmul.f32 0.25, %v6622_v21  ;;  %v6631_v17 = vmul.f32 0.25, %v6623_v44 }
 0xa75   :  { %v7728_v20 = vpop.f32.mrf.mxu0 }
 0xa76   :  { %v8864_v55 = vmul.f32 %v6630_v34, %v4905_v63  ;;  %v8866_v13 = vmul.f32 %v6631_v17, %v4906_v47  ;;  %v5013_v16 = vadd.f32 %v8871_v2, %v7728_v20 }
 0xa77   :  { %v5003_v18 = vpop.f32.mrf.mxu0 }
 0xa78   :  { %v5012_v6 = vadd.f32 %v8871_v2, %v5003_v18 }
 0xabc   :  { %v7733_v12 = vpop.f32.mrf.mxu1 }
 0xabd   :  { %v5096_v26 = vadd.f32 %v7733_v12, %v5013_v16 }
 0xac0   :  { %v7738_v28 = vpop.f32.mrf.mxu0 }
 0xac1   :  { %v5179_v7 = vadd.f32 %v7738_v28, %v5096_v26 }
 0xac2   :  { %v5169_v42 = vpop.f32.mrf.mxu0 }
 0xac8   :  { %v7754_v1 = vpop.f32.mrf.mxu0 }
 0xac9   :  { %v5361_v45 = vadd.f32 %v8668_v8, %v7754_v1 }
 0xaca   :  { %v5355_v22 = vpop.f32.mrf.mxu0 }
 0xacb   :  { %v5371_v27 = vadd.f32 %v5369_v48, %v5361_v45  ;;  %v5356_v46 = vadd.f32 %v8668_v8, %v5355_v22  ;;  %v5086_v8 = vpop.f32.mrf.mxu1 }
 0xacc   :  { %v5095_v14 = vadd.f32 %v5086_v8, %v5012_v6 }
 0xacd   :  { %vm5373_vm4 = vcmp.gt.f32.partialorder %v5371_v27, 0.5  ;;  %v5370_v35 = vadd.f32 %v5368_v49, %v5356_v46 }
 0xace   :  { %v7170_v11 = vsel %vm5373_vm4, 1.0, %v8154_v0  ;;  %v5178_v4 = vadd.f32 %v5169_v42, %v5095_v14 }
 0xacf   :  { %vm5372_vm5 = vcmp.gt.f32.partialorder %v5370_v35, 0.5 }
 0xad0   :  { %v7169_v61 = vsel %vm5372_vm5, 1.0, %v8154_v0 }
 0xad1   :  { %v8008_v43 = vpack.i.bf16 %v7170_v11, %v7169_v61 }
 0xad3   :  { %8009 = vrot.lane.b32.xlu0 %v8008_v43, %s8158_s11  ;;  %8004 = vrot.lane.b32.xlu1 %v8008_v43, %s8157_s10 }
 0xad7   :  { %5392 = vrot.lane.b32.xlu0 %v7169_v61, %s8156_s9  ;;  %8014 = vrot.lane.b32.xlu1 %v8008_v43, %s8159_s12 }
 0xadb   :  { %5468 = vrot.lane.b32.xlu1 %v7170_v11, %s8156_s9 }
 0xb33   :  { %v7743_v52 = vpop.f32.mrf.mxu1 }
 0xb34   :  { %v5262_v36 = vadd.f32 %v7743_v52, %v5179_v7 }
 0xb35   :  { %v5252_v33 = vpop.f32.mrf.mxu1 }
 0xb36   :  { %5265 = vst.msk [vmem:[#allocation8 + $0x30] sm:$0xff] %vm97_vm0, %v5262_v36  ;;  %v5261_v54 = vadd.f32 %v5252_v33, %v5178_v4 }
 0xb38   :  { %5264 = vst.msk [vmem:[#allocation8 + $0x10] sm:$0xff] %vm97_vm0, %v5261_v54 }
 0xb45   :  { %v8010_v56 = vpop.permute.xlu0 %8009  ;;  %v8005_v38 = vpop.permute.xlu1 %8004 }
 0xb46   :  { %v8012_v59 = vunpack.i.h.bf16 %v8010_v56  ;;  %v8011_v19 = vunpack.i.l.bf16 %v8010_v56  ;;  %v8007_v60 = vunpack.i.h.bf16 %v8005_v38  ;;  %v8006_v23 = vunpack.i.l.bf16 %v8005_v38  ;;  %8024 = vrot.lane.b32.xlu1 %v8010_v56, %s8156_s9  ;;  %8019 = vrot.lane.b32.xlu0 %v8005_v38, %s8156_s9 }
 0xb49   :  { %v5393_v29 = vpop.permute.xlu0 %5392  ;;  %v8015_v31 = vpop.permute.xlu1 %8014 }
 0xb4a   :  { %v8017_v63 = vunpack.i.h.bf16 %v8015_v31  ;;  %v8016_v47 = vunpack.i.l.bf16 %v8015_v31  ;;  %7756 = vmatpush3.xpose.msk.msra.mxu1 %vm201_vm6, %v5393_v29  ;;  %8034 = vrot.lane.b32.xlu1 %v8008_v43, %s8160_s13 }
 0xb4b   :  { %7760 = vmatprep.subr.mxu1 %v8154_v0  ;;  %8029 = vrot.lane.b32.xlu0 %v8015_v31, %s8156_s9 }
 0xb4d   :  { %7758 = vmatmul.mubr.msk.f32.vlgmr.msra.gmra.mxu1 %vm201_vm6, %v7169_v61  ;;  %v5469_v37 = vpop.permute.xlu1 %5468 }
 0xb4e   :  { %7761 = vmatpush3.xpose.msk.msra.mxu1 %vm201_vm6, %v5469_v37  ;;  %7762 = vmatprep.mubr.msk.f32.mxu1 %vm8155_vm3, %v8154_v0 }
 0xb4f   :  { %7770 = vmatprep.subr.mxu1 %v8154_v0  ;;  %8044 = vrot.lane.b32.xlu1 %v8010_v56, %s8160_s13 }
 0xb50   :  { %8039 = vrot.lane.b32.xlu0 %v8005_v38, %s8160_s13 }
 0xb51   :  { %7763 = vmatmul.mubr.msk.f32.vlgmr.msra.gmra.mxu1 %vm201_vm6, %v7170_v11 }
 0xb52   :  { %7772 = vmatprep.mubr.msk.f32.mxu1 %vm8155_vm3, %v8154_v0 }
 0xb54   :  { %8049 = vrot.lane.b32.xlu0 %v8015_v31, %s8160_s13 }
 0xbb8   :  { %v8020_v9 = vpop.permute.xlu0 %8019  ;;  %v8025_v44 = vpop.permute.xlu1 %8024 }
 0xbb9   :  { %v8022_v10 = vunpack.i.h.bf16 %v8020_v9  ;;  %v8021_v40 = vunpack.i.l.bf16 %v8020_v9  ;;  %v8027_v21 = vunpack.i.h.bf16 %v8025_v44  ;;  %v8026_v34 = vunpack.i.l.bf16 %v8025_v44 }
 0xbbb   :  { %7766 = vmatpush3.xpose.msk.msra.mxu0 %vm201_vm6, %v8021_v40  ;;  %7771 = vmatpush3.xpose.msk.msra.mxu1 %vm201_vm6, %v8022_v10 }
 0xbbc   :  { %7775 = vmatprep.subr.mxu0 %v8154_v0  ;;  %7780 = vmatprep.subr.mxu1 %v8154_v0  ;;  %v8035_v16 = vpop.permute.xlu1 %8034 }
 0xbbd   :  { %v8030_v17 = vpop.permute.xlu0 %8029  ;;  %v8037_v18 = vunpack.i.h.bf16 %v8035_v16  ;;  %v8036_v26 = vunpack.i.l.bf16 %v8035_v16 }
 0xbbe   :  { %7768 = vmatmul.mubr.msk.f32.vlgmr.msra.gmra.mxu0 %vm201_vm6, %v8006_v23  ;;  %7773 = vmatmul.mubr.msk.f32.vlgmr.msra.gmra.mxu1 %vm201_vm6, %v8007_v60  ;;  %v8032_v20 = vunpack.i.h.bf16 %v8030_v17  ;;  %v8031_v12 = vunpack.i.l.bf16 %v8030_v17 }
 0xbbf   :  { %7776 = vmatpush3.xpose.msk.msra.mxu0 %vm201_vm6, %v8026_v34  ;;  %7781 = vmatpush3.xpose.msk.msra.mxu1 %vm201_vm6, %v8027_v21 }
 0xbc0   :  { %7777 = vmatprep.mubr.msk.f32.mxu0 %vm8155_vm3, %v8154_v0  ;;  %7782 = vmatprep.mubr.msk.f32.mxu1 %vm8155_vm3, %v8154_v0 }
 0xbc1   :  { %7785 = vmatprep.subr.mxu0 %v8154_v0  ;;  %7790 = vmatprep.subr.mxu1 %v8154_v0  ;;  %v8045_v48 = vpop.permute.xlu1 %8044 }
 0xbc2   :  { %7778 = vmatmul.mubr.msk.f32.vlgmr.msra.gmra.mxu0 %vm201_vm6, %v8011_v19  ;;  %7783 = vmatmul.mubr.msk.f32.vlgmr.msra.gmra.mxu1 %vm201_vm6, %v8012_v59  ;;  %v8040_v28 = vpop.permute.xlu0 %8039  ;;  %v8047_v46 = vunpack.i.h.bf16 %v8045_v48  ;;  %v8046_v49 = vunpack.i.l.bf16 %v8045_v48 }
 0xbc3   :  { %7786 = vmatpush3.xpose.msk.msra.mxu0 %vm201_vm6, %v8031_v12  ;;  %7791 = vmatpush3.xpose.msk.msra.mxu1 %vm201_vm6, %v8032_v20  ;;  %v8041_v32 = vunpack.i.l.bf16 %v8040_v28  ;;  %v8042_v39 = vunpack.i.h.bf16 %v8040_v28 }
 0xbc4   :  { %7787 = vmatprep.mubr.msk.f32.mxu0 %vm8155_vm3, %v8154_v0  ;;  %7792 = vmatprep.mubr.msk.f32.mxu1 %vm8155_vm3, %v8154_v0 }
 0xbc5   :  { %7795 = vmatprep.subr.mxu0 %v8154_v0  ;;  %7800 = vmatprep.subr.mxu1 %v8154_v0 }
 0xbc6   :  { %7788 = vmatmul.mubr.msk.f32.vlgmr.msra.gmra.mxu0 %vm201_vm6, %v8016_v47  ;;  %7793 = vmatmul.mubr.msk.f32.vlgmr.msra.gmra.mxu1 %vm201_vm6, %v8017_v63  ;;  %v8050_v35 = vpop.permute.xlu0 %8049 }
 0xbc7   :  { %7796 = vmatpush3.msra.mxu0 %v8036_v26  ;;  %7801 = vmatpush3.msra.mxu1 %v8037_v18  ;;  %v8052_v52 = vunpack.i.h.bf16 %v8050_v35  ;;  %v8051_v4 = vunpack.i.l.bf16 %v8050_v35 }
 0xbc8   :  { %7797 = vmatprep.mubr.msk.f32.mxu0 %vm8155_vm3, %v8154_v0  ;;  %7805 = vmatprep.subr.mxu0 %v8154_v0 }
 0xbc9   :  { %7802 = vmatprep.mubr.msk.f32.mxu1 %vm8155_vm3, %v8154_v0  ;;  %7810 = vmatprep.subr.mxu1 %v8154_v0 }
 0xc0d   :  { %v5464_v7 = vpop.f32.mrf.mxu1 }
 0xc0e   :  { %v6000_v41 = vsel %vm8312_vm7, %v5464_v7, 0.0 }
 0xc0f   :  { %v7759_v24 = vpop.f32.mrf.mxu1  ;;  %7798 = vmatmul.mubr.msk.f32.vlgmr.msra.gmra.mxu0 %vm201_vm6, %v6000_v41 }
 0xc10   :  { %7806 = vmatpush3.msra.mxu0 %v8041_v32  ;;  %7807 = vmatprep.mubr.msk.f32.mxu0 %vm8155_vm3, %v8154_v0 }
 0xc11   :  { %v5540_v42 = vpop.f32.mrf.mxu1  ;;  %7815 = vmatprep.subr.mxu0 %v8154_v0 }
 0xc12   :  { %v6001_v1 = vsel %vm8312_vm7, %v5540_v42, 0.0 }
 0xc13   :  { %v7764_v45 = vpop.f32.mrf.mxu1  ;;  %7803 = vmatmul.mubr.msk.f32.vlgmr.msra.gmra.mxu1 %vm201_vm6, %v6001_v1 }
 0xc14   :  { %7811 = vmatpush3.msra.mxu1 %v8042_v39  ;;  %7812 = vmatprep.mubr.msk.f32.mxu1 %vm8155_vm3, %v8154_v0 }
 0xc15   :  { %7820 = vmatprep.subr.mxu1 %v8154_v0 }
 0xc7e   :  { %v5616_v22 = vpop.f32.mrf.mxu0  ;;  %v5692_v27 = vpop.f32.mrf.mxu1 }
 0xc7f   :  { %v6002_v11 = vsel %vm8312_vm7, %v5616_v22, 0.0  ;;  %v6003_v61 = vsel %vm8312_vm7, %v5692_v27, 0.0 }
 0xc80   :  { %v7769_v43 = vpop.f32.mrf.mxu0  ;;  %v7774_v8 = vpop.f32.mrf.mxu1  ;;  %7808 = vmatmul.mubr.msk.f32.vlgmr.msra.gmra.mxu0 %vm201_vm6, %v6002_v11  ;;  %7813 = vmatmul.mubr.msk.f32.vlgmr.msra.gmra.mxu1 %vm201_vm6, %v6003_v61 }
 0xc81   :  { %7816 = vmatpush3.msra.mxu0 %v8046_v49  ;;  %7821 = vmatpush3.msra.mxu1 %v8047_v46 }
 0xc82   :  { %v5768_v6 = vpop.f32.mrf.mxu0  ;;  %v5844_v14 = vpop.f32.mrf.mxu1  ;;  %7817 = vmatprep.mubr.msk.f32.mxu0 %vm8155_vm3, %v8154_v0  ;;  %7822 = vmatprep.mubr.msk.f32.mxu1 %vm8155_vm3, %v8154_v0 }
 0xc83   :  { %v6004_v36 = vsel %vm8312_vm7, %v5768_v6, 0.0  ;;  %v6005_v33 = vsel %vm8312_vm7, %v5844_v14, 0.0  ;;  %7825 = vmatprep.subr.mxu0 %v8154_v0  ;;  %7830 = vmatprep.subr.mxu1 %v8154_v0 }
 0xc84   :  { %v7779_v54 = vpop.f32.mrf.mxu0  ;;  %v7784_v56 = vpop.f32.mrf.mxu1  ;;  %7818 = vmatmul.mubr.msk.f32.vlgmr.msra.gmra.mxu0 %vm201_vm6, %v6004_v36  ;;  %7823 = vmatmul.mubr.msk.f32.vlgmr.msra.gmra.mxu1 %vm201_vm6, %v6005_v33 }
 0xc85   :  { %7826 = vmatpush3.msra.mxu0 %v8051_v4  ;;  %7831 = vmatpush3.msra.mxu1 %v8052_v52 }
 0xc86   :  { %v5920_v38 = vpop.f32.mrf.mxu0  ;;  %v5996_v59 = vpop.f32.mrf.mxu1  ;;  %7827 = vmatprep.mubr.msk.f32.mxu0 %vm8155_vm3, %v8154_v0  ;;  %7832 = vmatprep.mubr.msk.f32.mxu1 %vm8155_vm3, %v8154_v0 }
 0xc87   :  { %v6006_v19 = vsel %vm8312_vm7, %v5920_v38, 0.0  ;;  %v6007_v60 = vsel %vm8312_vm7, %v5996_v59, 0.0  ;;  %7835 = vmatprep.subr.mxu0 %v8784_v25  ;;  %7840 = vmatprep.subr.mxu1 %v8787_v50 }
 0xc88   :  { %v7789_v23 = vpop.f32.mrf.mxu0  ;;  %v7794_v29 = vpop.f32.mrf.mxu1  ;;  %7828 = vmatmul.mubr.msk.f32.vlgmr.msra.gmra.mxu0 %vm201_vm6, %v6006_v19  ;;  %7833 = vmatmul.mubr.msk.f32.vlgmr.msra.gmra.mxu1 %vm201_vm6, %v6007_v60 }
 0xc89   :  { %7836 = vmatpush3.msra.mxu0 %v8784_v25  ;;  %7841 = vmatpush3.msra.mxu1 %v8787_v50 }
 0xc8a   :  { %7845 = vmatprep.subr.mxu0 %v8798_v15  ;;  %7850 = vmatprep.subr.mxu1 %v8801_v30 }
 0xccf   :  { %v6080_v53 = vpop.f32.mrf.mxu0 }
 0xcd0   :  { %v6640_v31 = vadd.f32 %v8812_v51, %v6080_v53 }
 0xcd1   :  { %v7799_v63 = vpop.f32.mrf.mxu0 }
 0xcd2   :  { %vm6648_vm3 = vcmp.gt.f32.partialorder %v6640_v31, 0.5 }
 0xcd3   :  { %v7195_v47 = vsel %vm6648_vm3, 1.0, %v8154_v0  ;;  %v6156_v37 = vpop.f32.mrf.mxu1 }
 0xcd4   :  { %v6641_v9 = vadd.f32 %v8814_v5, %v6156_v37  ;;  %7837 = vmatprep.mubr.msk.f32.mxu0 %vm201_vm6, %v7195_v47 }
 0xcd5   :  { %v7804_v10 = vpop.f32.mrf.mxu1 }
 0xcd6   :  { %vm6649_vm7 = vcmp.gt.f32.partialorder %v6641_v9, 0.5 }
 0xcd7   :  { %v7196_v25 = vsel %vm6649_vm7, 1.0, %v8154_v0 }
 0xcd8   :  { %7838 = vmatmul.mubr.msk.f32.vlgmr.msra.gmra.mxu0 %vm201_vm6, %v7196_v25 }
 0xcd9   :  { %7846 = vmatpush3.msra.mxu0 %v8798_v15 }
 0xd40   :  { %v6232_v50 = vpop.f32.mrf.mxu0  ;;  %v6308_v40 = vpop.f32.mrf.mxu1 }
 0xd41   :  { %v6642_v51 = vadd.f32 %v8834_v57, %v6232_v50  ;;  %v6643_v44 = vadd.f32 %v8836_v58, %v6308_v40 }
 0xd42   :  { %v7809_v21 = vpop.f32.mrf.mxu0  ;;  %v7814_v34 = vpop.f32.mrf.mxu1 }
 0xd43   :  { %vm6650_vm8 = vcmp.gt.f32.partialorder %v6642_v51, 0.5  ;;  %vm6651_vm9 = vcmp.gt.f32.partialorder %v6643_v44, 0.5 }
 0xd44   :  { %v7197_v5 = vsel %vm6650_vm8, 1.0, %v8154_v0  ;;  %v7198_v17 = vsel %vm6651_vm9, 1.0, %v8154_v0  ;;  %v6384_v20 = vpop.f32.mrf.mxu0  ;;  %v6460_v12 = vpop.f32.mrf.mxu1 }
 0xd45   :  { %v6644_v16 = vadd.f32 %v8843_v62, %v6384_v20  ;;  %v6645_v15 = vadd.f32 %v8846_v3, %v6460_v12  ;;  %7842 = vmatprep.mubr.msk.f32.mxu1 %vm201_vm6, %v7197_v5 }
 0xd46   :  { %v7819_v18 = vpop.f32.mrf.mxu0  ;;  %v7824_v57 = vpop.f32.mrf.mxu1  ;;  %7843 = vmatmul.mubr.msk.f32.vlgmr.msra.gmra.mxu1 %vm201_vm6, %v7198_v17 }
 0xd47   :  { %vm6652_vm10 = vcmp.gt.f32.partialorder %v6644_v16, 0.5  ;;  %vm6653_vm11 = vcmp.gt.f32.partialorder %v6645_v15, 0.5  ;;  %7851 = vmatpush3.msra.mxu1 %v8801_v30 }
 0xd48   :  { %v7199_v58 = vsel %vm6652_vm10, 1.0, %v8154_v0  ;;  %v7200_v26 = vsel %vm6653_vm11, 1.0, %v8154_v0  ;;  %v6536_v28 = vpop.f32.mrf.mxu0  ;;  %v6612_v7 = vpop.f32.mrf.mxu1 }
 0xd49   :  { %v6646_v62 = vadd.f32 %v8864_v55, %v6536_v28  ;;  %v6647_v3 = vadd.f32 %v8866_v13, %v6612_v7  ;;  %7847 = vmatprep.mubr.msk.f32.mxu0 %vm201_vm6, %v7199_v58 }
 0xd4a   :  { %v7829_v32 = vpop.f32.mrf.mxu0  ;;  %v7834_v41 = vpop.f32.mrf.mxu1  ;;  %7848 = vmatmul.mubr.msk.f32.vlgmr.msra.gmra.mxu0 %vm201_vm6, %v7200_v26 }
 0xd4b   :  { %vm6654_vm12 = vcmp.gt.f32.partialorder %v6646_v62, 0.5  ;;  %vm6655_vm13 = vcmp.gt.f32.partialorder %v6647_v3, 0.5 }
 0xd4c   :  { %v7201_v30 = vsel %vm6654_vm12, 1.0, %v8154_v0  ;;  %v7202_v24 = vsel %vm6655_vm13, 1.0, %v8154_v0 }
 0xd4d   :  { %7852 = vmatprep.mubr.msk.f32.mxu1 %vm201_vm6, %v7201_v30 }
 0xd4e   :  { %7853 = vmatmul.mubr.msk.f32.vlgmr.msra.gmra.mxu1 %vm201_vm6, %v7202_v24 }
 0xd98   :  { %v7839_v42 = vpop.f32.mrf.mxu0 }
 0xd99   :  { %v6754_v13 = vadd.f32 %v8871_v2, %v7839_v42 }
 0xd9a   :  { %v6744_v39 = vpop.f32.mrf.mxu0 }
 0xd9b   :  { %v6753_v48 = vadd.f32 %v8871_v2, %v6744_v39 }
 0xe06   :  { %v7844_v55 = vpop.f32.mrf.mxu1 }
 0xe07   :  { %v6837_v22 = vadd.f32 %v7844_v55, %v6754_v13 }
 0xe08   :  { %v6827_v1 = vpop.f32.mrf.mxu1 }
 0xe09   :  { %v6836_v46 = vadd.f32 %v6827_v1, %v6753_v48 }
 0xe0a   :  { %v7849_v45 = vpop.f32.mrf.mxu0 }
 0xe0b   :  { %v6920_v49 = vadd.f32 %v7849_v45, %v6837_v22 }
 0xe0c   :  { %v6910_v27 = vpop.f32.mrf.mxu0 }
 0xe0d   :  { %v6919_v0 = vadd.f32 %v6910_v27, %v6836_v46 }
 0xe0e   :  { %v7854_v35 = vpop.f32.mrf.mxu1 }
 0xe0f   :  { %v7003_v11 = vadd.f32 %v7854_v35, %v6920_v49 }
 0xe10   :  { %v6993_v61 = vpop.f32.mrf.mxu1 }
 0xe11   :  { %7006 = vst.msk [vmem:[#allocation8 + $0x38] sm:$0xff] %vm97_vm0, %v7003_v11  ;;  %v7002_v43 = vadd.f32 %v6993_v61, %v6919_v0 }
 0xe13   :  { %7005 = vst.msk [vmem:[#allocation8 + $0x18] sm:$0xff] %vm97_vm0, %v7002_v43 }
 0xe14   :  { %8134 = shalt.err (!%p8131_p5)
}
 0xe15   :  { %7018 = dma.vmem_to_hbm [thread:$0]  %s7013_s19, 1024, %s9026_s5, [#allocation4], %s8151_s23, %s8151_s23, %s8152_s24  }
 0xe16   :  { %8147 = dma.done.wait [#allocation4], 1024  }
 0xe17   :  { %8148 = vsyncadd [#allocation4], 4294966272 }
 0xe18   :  { %7022 = vsyncpa [#allocation3], 1 }
 0xe19   :  { %7023 = vsyncpa [#allocation6], 1 }
 0xe1a   :  { %7024 = vsyncpa [#allocation4], 1 }

</bundles_post_ra>
